<compile_context>
chip_gen: v7x
topology: tpu7x:2x2x1
jax: 0.10.0
libtpu: 0.0.40
codegen_flags: <defaults>
</compile_context>

<pallas_src>
import functools

import jax
import jax.numpy as jnp
from jax import lax
from jax.experimental import pallas as pl
from jax.experimental.pallas import tpu as pltpu


def _fused_deconv_kernel(x_ref, t1_ref, b1_ref, t2_ref, b2_ref, o_ref, ypad_ref,
                         *, k, bb, hout1, hout2, row0):
    """bb batch elements: deconv (one im2row matmul) + bias + ReLU + 3x3 conv + bias.

    x_ref   : (bb*Hout1, k*W*Cin)         im2row slab of the RAW input rows
    t1_ref  : (k*W*Cin, Wout1*Cout)       deconv banded operator (dilation+pad folded in)
    b1_ref  : (1, Wout1*Cout)
    t2_ref  : (k, Wout1*Cout, Wout2*Cout) 3x3-conv banded row operator (col pad folded in)
    b2_ref  : (1, Wout2*Cout)
    o_ref   : (bb, Hout2, Wout2*Cout)     lane-dense output (256 = 2*128 lanes)
    ypad_ref: (bb, 48, Wout1*Cout)        VMEM scratch; data rows row0..row0+Hout1-1
    """
    fw1 = t1_ref.shape[-1]

    # Zero ONLY conv2's two row-padding rows, unconditionally every grid step.
    # (Each TensorCore has its own scratch under "parallel" sharding, so a
    #  program_id==0 gated init would leave stale VMEM on the other core.)
    zrow = jnp.zeros((bb, 1, fw1), jnp.float32)
    ypad_ref[:, row0 - 1:row0, :] = zrow
    ypad_ref[:, row0 + hout1:row0 + hout1 + 1, :] = zrow

    # ---- ConvTranspose2d: ONE im2row MXU matmul (M = bb*Hout1) + bias + ReLU ----
    y1 = jnp.dot(x_ref[...], t1_ref[...], preferred_element_type=jnp.float32)
    y1 = jnp.maximum(y1 + b1_ref[...], 0.0)                      # (bb*Hout1, fw1)
    for b in range(bb):                                          # aligned (mult-of-8) stores
        ypad_ref[b, row0:row0 + hout1, :] = y1[b * hout1:(b + 1) * hout1, :]

    # ---- Conv2d(Cout, Cout, k, stride=1, padding=1) + bias: k matmuls / element ----
    for b in range(bb):
        acc = jnp.dot(ypad_ref[b, row0 - 1:row0 - 1 + hout2, :], t2_ref[0],
                      preferred_element_type=jnp.float32)
        for ky in range(1, k):
            acc += jnp.dot(ypad_ref[b, row0 - 1 + ky:row0 - 1 + ky + hout2, :],
                           t2_ref[ky], preferred_element_type=jnp.float32)
        o_ref[b] = (acc + b2_ref[...]).astype(o_ref.dtype)


def _band_row_operator(w_iokk, win, wout, *, stride, offset):
    """Banded operator T with T[ky, x*Cin+i, ox*Cout+o] = w_iokk[i,o,ky, x*stride+offset-ox].

    Multiplying a fused (rows, Win*Cin) slab by T[ky] produces, for every row, the
    full (Wout*Cout) fused contribution of kernel row ky: column taps, channel
    mixing, column dilation (stride) and column padding (offset) are all folded
    into one matrix; out-of-band entries are zero.
    """
    cin, cout, k, _ = w_iokk.shape
    x = jnp.arange(win)[:, None]                           # (Win, 1)
    ox = jnp.arange(wout)[None, :]                         # (1, Wout)
    kx = x * stride + offset - ox                          # (Win, Wout)
    valid = (kx >= 0) & (kx < k)
    g = w_iokk[:, :, :, jnp.clip(kx, 0, k - 1)]            # (Cin,Cout,k,Win,Wout)
    g = jnp.where(valid[None, None, None], g, 0.0)
    g = jnp.transpose(g, (2, 3, 0, 4, 1))                  # (k,Win,Cin,Wout,Cout)
    return g.reshape(k, win * cin, wout * cout)


def basic_deconv_block(x_nchw, params, kernel_size, stride, padding,
                       output_padding=1, batch_block=None):
    """Forward of BasicDeconvBlock. x_nchw: (N, Cin, H, W) -> (N, Cout, H2, W2)."""
    wt, bt, wc, bc = params          # wt: (Cin, Cout, k, k); wc: (Cout, Cout, k, k)
    k = kernel_size
    n, cin, h, w = x_nchw.shape
    cout = wt.shape[1]

    pad_lo = k - 1 - padding
    hout1 = (h - 1) * stride - 2 * padding + k + output_padding
    wout1 = (w - 1) * stride - 2 * padding + k + output_padding
    hout2 = hout1 + 2 - k + 1                     # conv2: stride 1, pad 1
    wout2 = wout1 + 2 - k + 1
    fw1, fw2 = wout1 * cout, wout2 * cout
    kk1 = k * w * cin                             # conv1 matmul K (raw, undilated rows)

    # Batch-stacking factor: amortize per-step overhead on single-TC v5e/v6e,
    # but keep >= 2 grid steps so both v7x TensorCores get work.
    if batch_block is None:
        batch_block = max(1, min(n // 2, 8)) if n >= 2 else 1
    bb = max(1, min(batch_block, n))
    n_pad = ((n + bb - 1) // bb) * bb

    # -------- plain-JAX glue: fused layout, im2row row gather, band operators -------
    x_f = jnp.transpose(x_nchw, (0, 2, 3, 1)).astype(jnp.float32).reshape(n, h, w * cin)

    # Row gather: for output row oy and kernel row ky the dilated row index is
    # d = oy + ky - pad_lo; it maps to raw input row d//stride iff d is a valid
    # multiple of stride, else the section is zero (row dilation + row padding).
    oy = jnp.arange(hout1)[:, None]
    kyi = jnp.arange(k)[None, :]
    d = oy + kyi - pad_lo                                           # (Hout1, k)
    ok = (d >= 0) & (d % stride == 0) & (d <= (h - 1) * stride)
    ysrc = jnp.clip(d // stride, 0, h - 1)
    rows = jnp.where(ok[None, :, :, None], x_f[:, ysrc, :], 0.0)    # (N,Hout1,k,W*Cin)
    x_im = rows.reshape(n, hout1, kk1)
    if n_pad != n:
        x_im = jnp.pad(x_im, ((0, n_pad - n), (0, 0), (0, 0)))
    x_im = x_im.reshape(n_pad * hout1, kk1)

    # ConvTranspose == conv with the flipped kernel; column dilation + padding are
    # folded into the band operator (stride=stride, offset=pad_lo).
    w1 = wt[:, :, ::-1, ::-1].astype(jnp.float32)                   # (Cin,Cout,k,k)
    t1 = _band_row_operator(w1, w, wout1, stride=stride, offset=pad_lo)
    t1 = t1.reshape(kk1, fw1)
    b1 = jnp.tile(bt.astype(jnp.float32), wout1).reshape(1, fw1)

    w2 = jnp.transpose(wc, (1, 0, 2, 3)).astype(jnp.float32)        # (Cin',Cout,k,k)
    t2 = _band_row_operator(w2, wout1, wout2, stride=1, offset=1)   # col pad = 1
    b2 = jnp.tile(bc.astype(jnp.float32), wout2).reshape(1, fw2)

    row0 = 8                                           # sublane-aligned data offset
    scratch_rows = ((row0 + hout1 + 1 + 7) // 8) * 8   # 48 for Hout1 = 32

    kernel = functools.partial(_fused_deconv_kernel, k=k, bb=bb,
                               hout1=hout1, hout2=hout2, row0=row0)
    out = pl.pallas_call(
        kernel,
        out_shape=jax.ShapeDtypeStruct((n_pad, hout2, fw2), jnp.float32),
        grid_spec=pltpu.PrefetchScalarGridSpec(
            num_scalar_prefetch=0,
            grid=(n_pad // bb,),
            in_specs=[
                pl.BlockSpec((bb * hout1, kk1), lambda i: (i, 0)),
                pl.BlockSpec((kk1, fw1), lambda i: (0, 0)),
                pl.BlockSpec((1, fw1), lambda i: (0, 0)),
                pl.BlockSpec((k, fw1, fw2), lambda i: (0, 0, 0)),
                pl.BlockSpec((1, fw2), lambda i: (0, 0)),
            ],
            out_specs=pl.BlockSpec((bb, hout2, fw2), lambda i: (i, 0, 0)),
            scratch_shapes=[pltpu.VMEM((bb, scratch_rows, fw1), jnp.float32)],
        ),
        compiler_params=pltpu.CompilerParams(
            dimension_semantics=("parallel",)),
    )(x_im, t1, b1, t2, b2)

    # (N, Hout2, Wout2*Cout) -> (N, Hout2, Wout2, Cout) -> NCHW
    out = out[:n].reshape(n, hout2, wout2, cout)
    return jnp.transpose(out, (0, 3, 1, 2))


def reference(x_nchw, params, k, stride, padding, output_padding=1):
    """Pure-JAX reference using lax.conv_general_dilated (independent of the kernel)."""
    wt, bt, wc, bc = params
    w_conv = jnp.transpose(wt, (1, 0, 2, 3))[:, :, ::-1, ::-1]
    y = lax.conv_general_dilated(
        x_nchw, w_conv, window_strides=(1, 1),
        padding=((k - 1 - padding, k - 1 - padding + output_padding),) * 2,
        lhs_dilation=(stride, stride),
        dimension_numbers=('NCHW', 'OIHW', 'NCHW')) + bt[None, :, None, None]
    y = jnp.maximum(y, 0.0)
    z = lax.conv_general_dilated(
        y, wc, window_strides=(1, 1), padding=((1, 1), (1, 1)),
        dimension_numbers=('NCHW', 'OIHW', 'NCHW')) + bc[None, :, None, None]
    return z


if __name__ == "__main__":
    key = jax.random.PRNGKey(0)
    n, cin, h, w = 2, 4, 16, 16
    cout, k, stride, padding = 8, 3, 2, 1

    k1, k2, k3, k4, k5 = jax.random.split(key, 5)
    x = jax.random.normal(k1, (n, cin, h, w), jnp.float32)
    # Deterministic synthetic params (shapes follow nn.ConvTranspose2d / nn.Conv2d).
    wt = jax.random.normal(k2, (cin, cout, k, k), jnp.float32) * 0.1
    bt = jax.random.normal(k3, (cout,), jnp.float32) * 0.1
    wc = jax.random.normal(k4, (cout, cout, k, k), jnp.float32) * 0.1
    bc = jax.random.normal(k5, (cout,), jnp.float32) * 0.1
    params = (wt, bt, wc, bc)

    ref = reference(x, params, k, stride, padding)

    # Default config: bb=1, grid=(N,) -> one element per TensorCore on v7x.
    out = jax.block_until_ready(basic_deconv_block(x, params, k, stride, padding))
    assert out.shape == ref.shape == (n, cout, 2 * h, 2 * w), (out.shape, ref.shape)
    max_err = float(jnp.max(jnp.abs(out - ref)))
    assert jnp.allclose(out, ref, atol=2e-4, rtol=2e-4), max_err

    # Batch-stacked config (M = bb*Hout1 rows per MXU call, for single-TC chips).
    out2 = jax.block_until_ready(
        basic_deconv_block(x, params, k, stride, padding, batch_block=2))
    max_err2 = float(jnp.max(jnp.abs(out2 - ref)))
    assert jnp.allclose(out2, ref, atol=2e-4, rtol=2e-4), max_err2

    print("KERNEL_OK")
</pallas_src>

<mosaic_0001>
module attributes {stable_mosaic.version = 11 : i64} {
  func.func @_fused_deconv_kernel(%arg0: i32, %arg1: memref<32x192xf32, #tpu.memory_space<vmem>>, %arg2: memref<192x256xf32, #tpu.memory_space<vmem>>, %arg3: memref<1x256xf32, #tpu.memory_space<vmem>>, %arg4: memref<3x256x256xf32, #tpu.memory_space<vmem>>, %arg5: memref<1x256xf32, #tpu.memory_space<vmem>>, %arg6: memref<1x32x256xf32, #tpu.memory_space<vmem>>, %arg7: memref<1x48x256xf32, #tpu.memory_space<vmem>>) attributes {dimension_semantics = [#tpu.dimension_semantics<parallel>], iteration_bounds = array<i64: 2>, scalar_prefetch = 0 : i64, scratch_operands = 1 : i64, tpu.core_type = #tpu.core_type<tc>, window_params = [{transform_indices = @transform_0, window_bounds = array<i64: 32, 192>}, {pipeline_mode = #tpu.pipeline_mode<synchronous>, transform_indices = @transform_1, window_bounds = array<i64: 192, 256>}, {pipeline_mode = #tpu.pipeline_mode<synchronous>, transform_indices = @transform_2, window_bounds = array<i64: 1, 256>}, {pipeline_mode = #tpu.pipeline_mode<synchronous>, transform_indices = @transform_3, window_bounds = array<i64: 3, 256, 256>}, {pipeline_mode = #tpu.pipeline_mode<synchronous>, transform_indices = @transform_4, window_bounds = array<i64: 1, 256>}, {transform_indices = @transform_5, window_bounds = array<i64: 1, 32, 256>}]} {
    %cst = arith.constant 0.000000e+00 : f32
    %0 = vector.broadcast %cst : f32 to vector<1x1x256xf32>
    %c0 = arith.constant 0 : index
    %c7 = arith.constant 7 : index
    %c0_0 = arith.constant 0 : index
    %1 = vector.load %arg7[%c0, %c7, %c0_0] : memref<1x48x256xf32, #tpu.memory_space<vmem>>, vector<1x1x256xf32>
    tpu.vector_store %arg7[%c0, %c7, %c0_0], %0 {strides = array<i32>} : memref<1x48x256xf32, #tpu.memory_space<vmem>>, vector<1x1x256xf32>,
    %c0_1 = arith.constant 0 : index
    %c40 = arith.constant 40 : index
    %c0_2 = arith.constant 0 : index
    %2 = vector.load %arg7[%c0_1, %c40, %c0_2] : memref<1x48x256xf32, #tpu.memory_space<vmem>>, vector<1x1x256xf32>
    tpu.vector_store %arg7[%c0_1, %c40, %c0_2], %0 {strides = array<i32>} : memref<1x48x256xf32, #tpu.memory_space<vmem>>, vector<1x1x256xf32>,
    %c0_3 = arith.constant 0 : index
    %c0_4 = arith.constant 0 : index
    %3 = vector.load %arg1[%c0_3, %c0_4] : memref<32x192xf32, #tpu.memory_space<vmem>>, vector<32x192xf32>
    %c0_5 = arith.constant 0 : index
    %c0_6 = arith.constant 0 : index
    %4 = vector.load %arg2[%c0_5, %c0_6] : memref<192x256xf32, #tpu.memory_space<vmem>>, vector<192x256xf32>
    %cst_7 = arith.constant dense<0.000000e+00> : vector<32x256xf32>
    %5 = tpu.matmul %3, %4, %cst_7 {dimension_numbers = #tpu.dot_dimension_numbers<[1], [0], [0], [1], [0, 0, 1, 1], [], []>} : vector<32x192xf32>, vector<192x256xf32>, vector<32x256xf32> -> vector<32x256xf32>
    %c0_8 = arith.constant 0 : index
    %c0_9 = arith.constant 0 : index
    %6 = vector.load %arg3[%c0_8, %c0_9] : memref<1x256xf32, #tpu.memory_space<vmem>>, vector<1x256xf32>
    %7 = vector.broadcast %6 : vector<1x256xf32> to vector<32x256xf32>
    %8 = arith.addf %5, %7 : vector<32x256xf32>
    %cst_10 = arith.constant 0.000000e+00 : f32
    %9 = vector.broadcast %cst_10 : f32 to vector<32x256xf32>
    %10 = arith.maximumf %8, %9 : vector<32x256xf32>
    %c0_11 = arith.constant 0 : index
    %c8 = arith.constant 8 : index
    %c0_12 = arith.constant 0 : index
    %11 = vector.load %arg7[%c0_11, %c8, %c0_12] : memref<1x48x256xf32, #tpu.memory_space<vmem>>, vector<1x32x256xf32>
    %12 = vector.shape_cast %11 : vector<1x32x256xf32> to vector<32x256xf32>
    %13 = vector.shape_cast %10 : vector<32x256xf32> to vector<1x32x256xf32>
    tpu.vector_store %arg7[%c0_11, %c8, %c0_12], %13 {strides = array<i32>} : memref<1x48x256xf32, #tpu.memory_space<vmem>>, vector<1x32x256xf32>,
    %c0_13 = arith.constant 0 : index
    %c7_14 = arith.constant 7 : index
    %c0_15 = arith.constant 0 : index
    %14 = vector.load %arg7[%c0_13, %c7_14, %c0_15] : memref<1x48x256xf32, #tpu.memory_space<vmem>>, vector<1x32x256xf32>
    %15 = vector.shape_cast %14 : vector<1x32x256xf32> to vector<32x256xf32>
    %c0_16 = arith.constant 0 : index
    %c0_17 = arith.constant 0 : index
    %c0_18 = arith.constant 0 : index
    %16 = vector.load %arg4[%c0_16, %c0_17, %c0_18] : memref<3x256x256xf32, #tpu.memory_space<vmem>>, vector<1x256x256xf32>
    %17 = vector.shape_cast %16 : vector<1x256x256xf32> to vector<256x256xf32>
    %cst_19 = arith.constant dense<0.000000e+00> : vector<32x256xf32>
    %18 = tpu.matmul %15, %17, %cst_19 {dimension_numbers = #tpu.dot_dimension_numbers<[1], [0], [0], [1], [0, 0, 1, 1], [], []>} : vector<32x256xf32>, vector<256x256xf32>, vector<32x256xf32> -> vector<32x256xf32>
    %c0_20 = arith.constant 0 : index
    %c8_21 = arith.constant 8 : index
    %c0_22 = arith.constant 0 : index
    %19 = vector.load %arg7[%c0_20, %c8_21, %c0_22] : memref<1x48x256xf32, #tpu.memory_space<vmem>>, vector<1x32x256xf32>
    %20 = vector.shape_cast %19 : vector<1x32x256xf32> to vector<32x256xf32>
    %c1 = arith.constant 1 : index
    %c0_23 = arith.constant 0 : index
    %c0_24 = arith.constant 0 : index
    %21 = vector.load %arg4[%c1, %c0_23, %c0_24] : memref<3x256x256xf32, #tpu.memory_space<vmem>>, vector<1x256x256xf32>
    %22 = vector.shape_cast %21 : vector<1x256x256xf32> to vector<256x256xf32>
    %cst_25 = arith.constant dense<0.000000e+00> : vector<32x256xf32>
    %23 = tpu.matmul %20, %22, %cst_25 {dimension_numbers = #tpu.dot_dimension_numbers<[1], [0], [0], [1], [0, 0, 1, 1], [], []>} : vector<32x256xf32>, vector<256x256xf32>, vector<32x256xf32> -> vector<32x256xf32>
    %24 = arith.addf %18, %23 : vector<32x256xf32>
    %c0_26 = arith.constant 0 : index
    %c9 = arith.constant 9 : index
    %c0_27 = arith.constant 0 : index
    %25 = vector.load %arg7[%c0_26, %c9, %c0_27] : memref<1x48x256xf32, #tpu.memory_space<vmem>>, vector<1x32x256xf32>
    %26 = vector.shape_cast %25 : vector<1x32x256xf32> to vector<32x256xf32>
    %c2 = arith.constant 2 : index
    %c0_28 = arith.constant 0 : index
    %c0_29 = arith.constant 0 : index
    %27 = vector.load %arg4[%c2, %c0_28, %c0_29] : memref<3x256x256xf32, #tpu.memory_space<vmem>>, vector<1x256x256xf32>
    %28 = vector.shape_cast %27 : vector<1x256x256xf32> to vector<256x256xf32>
    %cst_30 = arith.constant dense<0.000000e+00> : vector<32x256xf32>
    %29 = tpu.matmul %26, %28, %cst_30 {dimension_numbers = #tpu.dot_dimension_numbers<[1], [0], [0], [1], [0, 0, 1, 1], [], []>} : vector<32x256xf32>, vector<256x256xf32>, vector<32x256xf32> -> vector<32x256xf32>
    %30 = arith.addf %24, %29 : vector<32x256xf32>
    %c0_31 = arith.constant 0 : index
    %c0_32 = arith.constant 0 : index
    %31 = vector.load %arg5[%c0_31, %c0_32] : memref<1x256xf32, #tpu.memory_space<vmem>>, vector<1x256xf32>
    %32 = vector.broadcast %31 : vector<1x256xf32> to vector<32x256xf32>
    %33 = arith.addf %30, %32 : vector<32x256xf32>
    %c0_33 = arith.constant 0 : index
    %c0_34 = arith.constant 0 : index
    %c0_35 = arith.constant 0 : index
    %34 = vector.load %arg6[%c0_33, %c0_34, %c0_35] : memref<1x32x256xf32, #tpu.memory_space<vmem>>, vector<1x32x256xf32>
    %35 = vector.shape_cast %34 : vector<1x32x256xf32> to vector<32x256xf32>
    %36 = vector.shape_cast %33 : vector<32x256xf32> to vector<1x32x256xf32>
    tpu.vector_store %arg6[%c0_33, %c0_34, %c0_35], %36 {strides = array<i32>} : memref<1x32x256xf32, #tpu.memory_space<vmem>>, vector<1x32x256xf32>,
    return
  }
  func.func @transform_0(%arg0: i32) -> (i32, i32) {
    %c0_i32 = arith.constant 0 : i32
    %c0_i32_0 = arith.constant 0 : i32
    return %arg0, %c0_i32 : i32, i32
  }
  func.func @transform_1(%arg0: i32) -> (i32, i32) {
    %c0_i32 = arith.constant 0 : i32
    %c0_i32_0 = arith.constant 0 : i32
    %c0_i32_1 = arith.constant 0 : i32
    return %c0_i32, %c0_i32_0 : i32, i32
  }
  func.func @transform_2(%arg0: i32) -> (i32, i32) {
    %c0_i32 = arith.constant 0 : i32
    %c0_i32_0 = arith.constant 0 : i32
    %c0_i32_1 = arith.constant 0 : i32
    return %c0_i32, %c0_i32_0 : i32, i32
  }
  func.func @transform_3(%arg0: i32) -> (i32, i32, i32) {
    %c0_i32 = arith.constant 0 : i32
    %c0_i32_0 = arith.constant 0 : i32
    %c0_i32_1 = arith.constant 0 : i32
    %c0_i32_2 = arith.constant 0 : i32
    return %c0_i32, %c0_i32_0, %c0_i32_1 : i32, i32, i32
  }
  func.func @transform_4(%arg0: i32) -> (i32, i32) {
    %c0_i32 = arith.constant 0 : i32
    %c0_i32_0 = arith.constant 0 : i32
    %c0_i32_1 = arith.constant 0 : i32
    return %c0_i32, %c0_i32_0 : i32, i32
  }
  func.func @transform_5(%arg0: i32) -> (i32, i32, i32) {
    %c0_i32 = arith.constant 0 : i32
    %c0_i32_0 = arith.constant 0 : i32
    %c0_i32_1 = arith.constant 0 : i32
    return %arg0, %c0_i32, %c0_i32_0 : i32, i32, i32
  }
}

</mosaic_0001>

<bundles_post_ra>
// kernel: tpu_custom_call.1
= control target key start
LH: loop header
LB: loop body
LE: loop exit
PB: predicated region body
PF: predicated region fallthrough
CT: control target
= control target key end

     0   :  { %10 = vsyncpa [#allocation4], 0  ;;  %s2081_s0 = inlined_call_operand.hbm [shape: f32[64,192], index: 0, kind: input, shape index: {}]   ;;  %s2082_s1 = inlined_call_operand.hbm [shape: f32[192,256], index: 1, kind: input, shape index: {}]   ;;  %s2083_s2 = inlined_call_operand.vmem [shape: f32[1,256], index: 2, kind: input, shape index: {}]   ;;  %s2084_s3 = inlined_call_operand.hbm [shape: f32[3,256,256], index: 3, kind: input, shape index: {}]   ;;  %s2085_s4 = inlined_call_operand.vmem [shape: f32[1,256], index: 4, kind: input, shape index: {}]   ;;  %s2086_s5 = inlined_call_operand.hbm [shape: f32[2,32,256], index: 5, kind: output, shape index: {}]  }
   0x1   :  { %12 = vsyncpa [#allocation4 + $0x1], 0 }
   0x2   :  { %13 = vsyncpa [#allocation7], 0 }
   0x3   :  { %14 = vsyncpa [#allocation5], 0 }
   0x4   :  { %16 = vsyncpa [#allocation5 + $0x1], 0  ;;  %s1720_s18 = smov 0   ;;  %s1722_s19 = smov 0  }
   0x5   :  { %s1724_s20 = smov 0   ;;  %s1726_s21 = smov 0  }
   0x6 LB: > { %s1741_s22 = sadd.s32 4294967295, %s1679_s21   ;;  %s1169_s23 = sadd.s32 4294967294, %s1679_s21   ;;  %s1679_s21 = sphi %s1726_s21, %s2106_s21   ;;  %s1675_s20 = sphi %s1724_s20, %s2105_s20   ;;  %s1671_s19 = sphi %s1722_s19, %s2104_s19   ;;  %s1667_s18 = sphi %s1720_s18, %s2103_s18  }
   0x7   : > { %p42_p0 = scmp.ne.s32.totalorder %s1671_s19, %s1667_s18  ;;  %p2087_p1 = scmp.eq.s32.totalorder %s1741_s22, 0 }
   0x8   : > { %p156_p3 = scmp.eq.s32.totalorder %s1169_s23, 1  ;;  %p1170_p5 = scmp.ge.s32.totalorder %s1679_s21, 1 }
   0x9   : > { %p1750_p4 = por %p2087_p1, %p42_p0  ;;  %p163_p7 = scmp.lt.s32.totalorder %s1679_s21, 3 }
   0xa   : > { %p1755_p6 = por %p156_p3, %p42_p0  ;;  %s1681_s27 = smov [#allocation6]  }
   0xb   : > { %s2090_s24 = scalar_select %p1750_p4, 1, 0 }
   0xc   : > { %s2091_s25 = scalar_select %p1755_p6, 1, 0 }
   0xd   : > { %p1760_p8 = pnand %p1170_p5, %p163_p7  ;;  %s175_s28 = sshll.u32 %s1681_s27, 4  ;;  %s1764_s28 = int_to_ptr.vmem [resolvable:$true] %s175_s28 }
   0xe   : > { %s1682_s30 = smov [#allocation8]   ;;  %s1523_s9 = scalar_lea.hbm %s2082_s1, 6144 }
   0xf   : > { %p1463_p9 = pneg %p1760_p8  ;;  %s191_s6 = sshll.u32 %s1682_s30, 4  ;;  %s1775_s6 = int_to_ptr.vmem [resolvable:$true] %s191_s6 }
  0x10   : > { %p1524_p12 = scmp.ne.s32.totalorder %s2082_s1, %s1523_s9  ;;  %p1530_p5 = scmp.lt.u32.totalorder %s1523_s9, %s2082_s1 }
  0x11   : > { %p1771_p11 = pnand %p1463_p9, %p2087_p1 }
  0x13   : > { %p1525_p13 = pneg %p1771_p11 }
  0x15   : > { %p1526_p0 = pnand %p1525_p13, %p1524_p12 }
  0x17   : > { %p1527_p3 = pneg %p1526_p0 }
  0x19   : > { %p1532_p7 = pnand %p1530_p5, %p1527_p3 }
  0x1b   : > { %1535 = shalt.err (!%p1532_p7)
}
  0x1c   : > { %s1536_s14 = scalar_lea.vmem %s1764_s28, 6144  ;;  %p1544_p2 = scmp.lt.s32.totalorder %s1764_s28, %s1764_s28 }
  0x1d   : > { %p1537_p9 = scmp.ne.s32.totalorder %s1764_s28, %s1536_s14  ;;  %p1545_p12 = scmp.lt.s32.totalorder %s1536_s14, %s1536_s14 }
  0x1f   : > { %p1539_p10 = pnand %p1537_p9, %p1525_p13  ;;  %p1546_p0 = por %p1545_p12, %p1544_p2 }
  0x21   : > { %p1540_p1 = pneg %p1539_p10 }
  0x23   : > { %p1547_p6 = pnand %p1546_p0, %p1540_p1 }
  0x25   : > { %1550 = shalt.err (!%p1547_p6)
}
  0x26   : > { %s1683_s15 = smov 256   ;;  %s1684_s16 = smov 16  }
  0x27   : > { %1466 = dma.hbm_to_vmem [thread:$0]  (!%p1771_p11), %s2082_s1, 6144, %s1764_s28, [#allocation7], %s1683_s15, %s1683_s15, %s1684_s16  }
  0x28   : > { %s1551_s7 = scalar_lea.hbm %s2084_s3, 24576 }
  0x29   : > { %p1552_p1 = scmp.ne.s32.totalorder %s2084_s3, %s1551_s7  ;;  %p1558_p10 = scmp.lt.u32.totalorder %s1551_s7, %s2084_s3 }
  0x2b   : > { %p1554_p2 = pnand %p1552_p1, %p1525_p13 }
  0x2d   : > { %p1555_p6 = pneg %p1554_p2 }
  0x2f   : > { %p1560_p3 = pnand %p1558_p10, %p1555_p6 }
  0x31   : > { %1563 = shalt.err (!%p1560_p3)
}
  0x32   : > { %s1564_s28 = scalar_lea.vmem %s1775_s6, 24576  ;;  %p1572_p12 = scmp.lt.s32.totalorder %s1775_s6, %s1775_s6 }
  0x33   : > { %p1565_p5 = scmp.ne.s32.totalorder %s1775_s6, %s1564_s28  ;;  %p1573_p0 = scmp.lt.s32.totalorder %s1564_s28, %s1564_s28 }
  0x35   : > { %p1567_p7 = pnand %p1565_p5, %p1525_p13  ;;  %p1574_p1 = por %p1573_p0, %p1572_p12 }
  0x37   : > { %p1568_p9 = pneg %p1567_p7 }
  0x39   : > { %p1575_p2 = pnand %p1574_p1, %p1568_p9 }
  0x3b   : > { %1578 = shalt.err (!%p1575_p2)
}
  0x3c   : > { %1469 = dma.hbm_to_vmem [thread:$0]  (!%p1771_p11), %s2084_s3, 24576, %s1775_s6, [#allocation7], %s1683_s15, %s1683_s15, %s1684_s16  }
  0x3d   : > { %s1836_s29 = sadd.s32 1, %s1679_s21   ;;  %s29_s14 = sadd.s32 1, %s1675_s20 }
  0x3e   : > { %s26_s17 = ssub.s32 %s1679_s21, %s1836_s29  ;;  %p36_p13 = scmp.ne.s32.totalorder %s1675_s20, %s1671_s19 }
  0x3f   : > { %p27_p6 = scmp.eq.s32.totalorder %s26_s17, 0  ;;  %p37_p10 = scmp.eq.s32.totalorder %s1679_s21, 0 }
  0x40   : > { %p2094_p3 = scmp.eq.s32.totalorder %s1741_s22, 1  ;;  %p1480_p7 = scmp.lt.s32.totalorder %s1679_s21, 2 }
  0x41   : > { %s1852_s27 = scalar_select %p27_p6, %s1675_s20, %s29_s14  }
  0x42   : > { %p1846_p5 = por %p2094_p3, %p36_p13  ;;  %p38_p9 = por %p37_p10, %p36_p13 }
  0x43   : > { %s208_s30 = sand.u32 1, %s1675_s20   ;;  %s1193_s6 = sshll.u32 %s1679_s21, 10 }
  0x44   : > { %s2095_s23 = scalar_select %p1846_p5, 1, 0 }
  0x45   : > { %s1174_s7 = sshll.u32 %s208_s30, 6  ;;  %s1859_s10 = scalar_lea.hbm %s2081_s0, %s1193_s6 }
  0x46   : > { %s212_s11 = scalar_lea.vmem [#allocation3], %s1174_s7  ;;  %p1863_p11 = pnand %p1480_p7, %p38_p9 }
  0x47   : > { %s220_s28 = sshll.u32 %s212_s11, 4  ;;  %s1867_s13 = scalar_lea.sflag [#allocation4], %s208_s30  ;;  %s1861_s28 = int_to_ptr.vmem [resolvable:$true] %s220_s28 }
  0x48   : > { %s1579_s14 = scalar_lea.hbm %s1859_s10, 1024  ;;  %p1581_p0 = pneg %p1863_p11 }
  0x49   : > { %p1580_p12 = scmp.ne.s32.totalorder %s1859_s10, %s1579_s14  ;;  %s1584_s6 = scalar_lea.hbm %s2081_s0, 2048 }
  0x4a   : > { %p1585_p13 = scmp.lt.u32.totalorder %s1859_s10, %s2081_s0  ;;  %p1586_p6 = scmp.lt.u32.totalorder %s1584_s6, %s1579_s14 }
  0x4b   : > { %p1582_p1 = pnand %p1581_p0, %p1580_p12  ;;  %p1588_p3 = scmp.lt.u32.totalorder %s1579_s14, %s1859_s10 }
  0x4c   : > { %p1587_p10 = por %p1586_p6, %p1585_p13 }
  0x4d   : > { %p1583_p2 = pneg %p1582_p1 }
  0x4e   : > { %p1589_p7 = por %p1588_p3, %p1587_p10 }
  0x50   : > { %p1590_p9 = pnand %p1589_p7, %p1583_p2 }
  0x52   : > { %1593 = shalt.err (!%p1590_p9)
}
  0x53   : > { %s1594_s30 = scalar_lea.vmem %s1861_s28, 1024  ;;  %s1685_s11 = smov [#allocation3]  }
  0x54   : > { %p1595_p12 = scmp.ne.s32.totalorder %s1861_s28, %s1594_s30  ;;  %s1599_s17 = sshll.u32 %s1685_s11, 4  ;;  %s1600_s17 = int_to_ptr.vmem [resolvable:$false] %s1599_s17 }
  0x55   : > { %s1601_s7 = scalar_lea.vmem %s1600_s17, 2048  ;;  %p1602_p4 = scmp.lt.s32.totalorder %s1861_s28, %s1600_s17 }
  0x56   : > { %p1597_p1 = pnand %p1595_p12, %p1581_p0  ;;  %p1603_p13 = scmp.lt.s32.totalorder %s1601_s7, %s1594_s30 }
  0x58   : > { %p1598_p5 = pneg %p1597_p1  ;;  %p1604_p6 = por %p1603_p13, %p1602_p4 }
  0x5a   : > { %p1605_p10 = pnand %p1604_p6, %p1598_p5 }
  0x5c   : > { %1608 = shalt.err (!%p1605_p10)
}
  0x5d   : > { %1473 = dma.hbm_to_vmem [thread:$0]  (!%p1863_p11), %s1859_s10, 1024, %s1861_s28, %s1867_s13, %s1683_s15, %s1683_s15, %s1684_s16  }
  0x5e   : > { %232 = sbr.rel (%p1760_p8) target bundleno = 685 (0x2ad), region = 40  ;;  %s1901_s14 = sand.u32 (!%p1760_p8), 1, %s1671_s19  }
  0x5f   : > { %s1179_s6 = sshll.u32 (!%p1760_p8), %s1901_s14, 6  ;;  %s235_s8 = scalar_lea.sflag (!%p1760_p8), [#allocation4], %s1901_s14 }
  0x60   : > { %s1907_s12 = scalar_lea.vmem (!%p1760_p8), [#allocation3], %s1179_s6  ;;  %p2097_p4 = scmp.ne.s32.totalorder (!%p1760_p8), %s2090_s24, 0 }
  0x65   : > { %1654 = dma.done.wait (%p2097_p4), %s235_s8, 1024  }
  0x66   : > { %1656 = vsyncadd (%p2097_p4), %s235_s8, 4294966272  ;;  %p2098_p5 = scmp.eq.s32.totalorder %s1741_s22, 0 }
  0x68   : > { %1658 = dma.done.wait (%p2098_p5), [#allocation7], 30720   ;;  %p2099_p8 = pmov %p2098_p5 }
  0x69   : > { %v274_v0 = vlaneseq  ;;  %v1686_v1 = vmov 0.0   ;;  %v293_v2 = vld [vmem:[#allocation6 + $0x8] sm:$0xff]  ;;  %v295_v3 = vld [vmem:[#allocation6 + $0x18] sm:$0xff]  ;;  %v292_v4 = vld [vmem:[#allocation6] sm:$0xff]  ;;  %vm352_vm1 = vcmask 523264   ;;  %vm710_vm2 = vcmask 1040384  }
  0x6a   : > { %1660 = vsyncadd (%p2099_p8), [#allocation7], 4294936576  ;;  %v1195_v5 = vpack.c.bf16 %v295_v3, %v293_v2  ;;  %v294_v6 = vld [vmem:[#allocation6 + $0x10] sm:$0xff]  ;;  %v297_v7 = vld [vmem:[#allocation6 + $0x28] sm:$0xff]  ;;  %vm911_vm3 = vcmask 1046528   ;;  %s272_s10 = scalar_lea.vmem [#allocation9], %s1179_s6 }
  0x6b   : > { %vm276_vm0 = vcmp.lt.s32.totalorder %v274_v0, 256  ;;  %v299_v8 = vld [vmem:[#allocation6 + $0x38] sm:$0xff]  ;;  %v1197_v9 = vpack.c.bf16 %v294_v6, %v292_v4  ;;  %v296_v11 = vld [vmem:[#allocation6 + $0x20] sm:$0xff]  ;;  %v298_v12 = vld [vmem:[#allocation6 + $0x30] sm:$0xff]  ;;  %s1077_s28 = sshll.u32 %s272_s10, 4  ;;  %s1194_s13 = sshll.u32 %s1741_s22, 10  ;;  %s2032_s28 = int_to_ptr.vmem [resolvable:$true] %s1077_s28 }
  0x6c   : > { %279 = vst.msk [vmem:[#allocation2 + $0x7] ss:$8 sm:$0x3] %vm276_vm0, %v1686_v1  ;;  %282 = vst.msk [vmem:[#allocation2 + $0x50] ss:$8 sm:$0x3] %vm276_vm0, %v1686_v1  ;;  %v1199_v10 = vpack.c.bf16 %v299_v8, %v297_v7  ;;  %1196 = vmatprep.subr.bf16.mxu0 %v1195_v5  ;;  %v1201_v15 = vpack.c.bf16 %v298_v12, %v296_v11  ;;  %s2037_s11 = scalar_lea.hbm %s2086_s5, %s1194_s13 }
  0x6d   : > { %v301_v13 = vld [vmem:[#allocation6 + $0x48] sm:$0xff]  ;;  %v303_v14 = vld [vmem:[#allocation6 + $0x58] sm:$0xff]  ;;  %1198 = vmatpush1.bf16.msra.mxu0 %v1197_v9  ;;  %v300_v17 = vld [vmem:[#allocation6 + $0x40] sm:$0xff]  ;;  %s1064_s22 = scalar_lea.sflag [#allocation5], %s1901_s14  ;;  %s1609_s17 = scalar_lea.vmem %s2032_s28, 1024 }
  0x6e   : > { %1200 = vmatprep.subr.bf16.mxu0 %v1199_v10  ;;  %v1203_v16 = vpack.c.bf16 %v303_v14, %v301_v13  ;;  %v302_v18 = vld [vmem:[#allocation6 + $0x50] sm:$0xff]  ;;  %v305_v19 = vld [vmem:[#allocation6 + $0x68] sm:$0xff]  ;;  %v307_v20 = vld [vmem:[#allocation6 + $0x78] sm:$0xff]  ;;  %p1610_p11 = scmp.ne.s32.totalorder %s2032_s28, %s1609_s17  ;;  %p2100_p0 = scmp.ne.s32.totalorder %s2095_s23, 0 }
  0x6f   : > { %v1205_v21 = vpack.c.bf16 %v302_v18, %v300_v17  ;;  %v1207_v22 = vpack.c.bf16 %v307_v20, %v305_v19  ;;  %v304_v23 = vld [vmem:[#allocation6 + $0x60] sm:$0xff]  ;;  %v306_v24 = vld [vmem:[#allocation6 + $0x70] sm:$0xff]  ;;  %v309_v25 = vld [vmem:[#allocation6 + $0x88] sm:$0xff]  ;;  %s1687_s7 = smov [#allocation9]  }
  0x70   : > { %v311_v26 = vld [vmem:[#allocation6 + $0x98] sm:$0xff]  ;;  %v1209_v27 = vpack.c.bf16 %v306_v24, %v304_v23  ;;  %v308_v29 = vld [vmem:[#allocation6 + $0x80] sm:$0xff]  ;;  %v310_v30 = vld [vmem:[#allocation6 + $0x90] sm:$0xff]  ;;  %p1611_p2 = pnand %p1610_p11, %p2100_p0  ;;  %s1613_s6 = sshll.u32 %s1687_s7, 4  ;;  %s1614_s6 = int_to_ptr.vmem [resolvable:$false] %s1613_s6 }
  0x71   : > { %1202 = vmatpush1.bf16.msra.mxu0 %v1201_v15  ;;  %v1211_v28 = vpack.c.bf16 %v311_v26, %v309_v25  ;;  %v313_v31 = vld [vmem:[#allocation6 + $0xa8] sm:$0xff]  ;;  %v315_v32 = vld [vmem:[#allocation6 + $0xb8] sm:$0xff]  ;;  %v1213_v33 = vpack.c.bf16 %v310_v30, %v308_v29  ;;  %v312_v36 = vld [vmem:[#allocation6 + $0xa0] sm:$0xff]  ;;  %s1615_s8 = scalar_lea.vmem %s1614_s6, 2048  ;;  %p1616_p7 = scmp.lt.s32.totalorder %s2032_s28, %s1614_s6 }
  0x72   : > { %1204 = vmatprep.subr.bf16.mxu0 %v1203_v16  ;;  %v285_v34 = vld [vmem:[%s1907_s12 + $0x8] sm:$0xff]  ;;  %v1215_v35 = vpack.c.bf16 %v315_v32, %v313_v31  ;;  %v314_v37 = vld [vmem:[#allocation6 + $0xb0] sm:$0xff]  ;;  %v319_v39 = vld [vmem:[#allocation6 + $0xd8] sm:$0xff]  ;;  %p1612_p3 = pneg %p1611_p2  ;;  %p1617_p9 = scmp.lt.s32.totalorder %s1615_s8, %s1609_s17 }
  0x73   : > { %1183 = vmatprep.mubr.msk.f32.mxu0 %vm352_vm1, %v285_v34  ;;  %v317_v38 = vld [vmem:[#allocation6 + $0xc8] sm:$0xff]  ;;  %v1217_v40 = vpack.c.bf16 %v314_v37, %v312_v36  ;;  %v483_v42 = vld [vmem:[#allocation8 + $0x18] sm:$0xff]  ;;  %v480_v43 = vld [vmem:[#allocation8] sm:$0xff] }
  0x74   : > { %v481_v41 = vld [vmem:[#allocation8 + $0x8] sm:$0xff]  ;;  %v1219_v44 = vpack.c.bf16 %v319_v39, %v317_v38  ;;  %v316_v45 = vld [vmem:[#allocation6 + $0xc0] sm:$0xff]  ;;  %v318_v46 = vld [vmem:[#allocation6 + $0xd0] sm:$0xff]  ;;  %p1618_p12 = por %p1617_p9, %p1616_p7 }
  0x75   : > { %1206 = vmatpush1.bf16.msra.mxu0 %v1205_v21  ;;  %v1307_v47 = vpack.c.bf16 %v483_v42, %v481_v41  ;;  %v482_v48 = vld [vmem:[#allocation8 + $0x10] sm:$0xff]  ;;  %v321_v49 = vld [vmem:[#allocation6 + $0xe8] sm:$0xff]  ;;  %v323_v50 = vld [vmem:[#allocation6 + $0xf8] sm:$0xff]  ;;  %v1221_v56 = vpack.c.bf16 %v318_v46, %v316_v45 }
  0x76   : > { %1208 = vmatprep.subr.bf16.mxu0 %v1207_v22  ;;  %v1309_v51 = vpack.c.bf16 %v482_v48, %v480_v43  ;;  %v485_v52 = vld [vmem:[#allocation8 + $0x28] sm:$0xff]  ;;  %v487_v53 = vld [vmem:[#allocation8 + $0x38] sm:$0xff]  ;;  %v484_v54 = vld [vmem:[#allocation8 + $0x20] sm:$0xff]  ;;  %v1223_v61 = vpack.c.bf16 %v323_v50, %v321_v49  ;;  %p1619_p1 = pnand %p1618_p12, %p1612_p3 }
  0x77   : > { %1308 = vmatprep.subr.bf16.mxu1 %v1307_v47  ;;  %v486_v55 = vld [vmem:[#allocation8 + $0x30] sm:$0xff]  ;;  %v320_v57 = vld [vmem:[#allocation6 + $0xe0] sm:$0xff]  ;;  %v1311_v59 = vpack.c.bf16 %v487_v53, %v485_v52  ;;  %v325_v62 = vld [vmem:[#allocation6 + $0x108] sm:$0xff] }
  0x78   : > { %v322_v58 = vld [vmem:[#allocation6 + $0xf0] sm:$0xff]  ;;  %1310 = vmatpush1.bf16.msra.mxu1 %v1309_v51  ;;  %v1313_v60 = vpack.c.bf16 %v486_v55, %v484_v54  ;;  %v489_v63 = vld [vmem:[#allocation8 + $0x48] sm:$0xff]  ;;  %v491_v1 = vld [vmem:[#allocation8 + $0x58] sm:$0xff] }
  0x79   : > { %1210 = vmatpush1.bf16.msra.mxu0 %v1209_v27  ;;  %v327_v2 = vld [vmem:[#allocation6 + $0x118] sm:$0xff]  ;;  %1312 = vmatprep.subr.bf16.mxu1 %v1311_v59  ;;  %v1315_v3 = vpack.c.bf16 %v491_v1, %v489_v63  ;;  %v488_v4 = vld [vmem:[#allocation8 + $0x40] sm:$0xff]  ;;  %v490_v5 = vld [vmem:[#allocation8 + $0x50] sm:$0xff]  ;;  %v1225_v6 = vpack.c.bf16 %v322_v58, %v320_v57 }
  0x7a   : > { %1212 = vmatprep.subr.bf16.mxu0 %v1211_v28  ;;  %v324_v7 = vld [vmem:[#allocation6 + $0x100] sm:$0xff]  ;;  %v1317_v8 = vpack.c.bf16 %v490_v5, %v488_v4  ;;  %v493_v9 = vld [vmem:[#allocation8 + $0x68] sm:$0xff]  ;;  %v495_v10 = vld [vmem:[#allocation8 + $0x78] sm:$0xff]  ;;  %v1227_v11 = vpack.c.bf16 %v327_v2, %v325_v62 }
  0x7b   : > { %v326_v12 = vld [vmem:[#allocation6 + $0x110] sm:$0xff]  ;;  %v1319_v13 = vpack.c.bf16 %v495_v10, %v493_v9  ;;  %v492_v14 = vld [vmem:[#allocation8 + $0x60] sm:$0xff]  ;;  %v329_v16 = vld [vmem:[#allocation6 + $0x128] sm:$0xff] }
  0x7c   : > { %1314 = vmatpush1.bf16.msra.mxu1 %v1313_v60  ;;  %v494_v15 = vld [vmem:[#allocation8 + $0x70] sm:$0xff]  ;;  %v331_v17 = vld [vmem:[#allocation6 + $0x138] sm:$0xff]  ;;  %v497_v18 = vld [vmem:[#allocation8 + $0x88] sm:$0xff]  ;;  %v1229_v20 = vpack.c.bf16 %v326_v12, %v324_v7 }
  0x7d   : > { %1214 = vmatpush1.bf16.msra.mxu0 %v1213_v33  ;;  %1316 = vmatprep.subr.bf16.mxu1 %v1315_v3  ;;  %v499_v19 = vld [vmem:[#allocation8 + $0x98] sm:$0xff]  ;;  %v328_v21 = vld [vmem:[#allocation6 + $0x120] sm:$0xff]  ;;  %v330_v22 = vld [vmem:[#allocation6 + $0x130] sm:$0xff]  ;;  %v1321_v23 = vpack.c.bf16 %v494_v15, %v492_v14  ;;  %v1231_v24 = vpack.c.bf16 %v331_v17, %v329_v16 }
  0x7e   : > { %1216 = vmatprep.subr.bf16.mxu0 %v1215_v35  ;;  %v333_v25 = vld [vmem:[#allocation6 + $0x148] sm:$0xff]  ;;  %v1323_v26 = vpack.c.bf16 %v499_v19, %v497_v18  ;;  %v496_v27 = vld [vmem:[#allocation8 + $0x80] sm:$0xff]  ;;  %v498_v28 = vld [vmem:[#allocation8 + $0x90] sm:$0xff]  ;;  %v1233_v32 = vpack.c.bf16 %v330_v22, %v328_v21 }
  0x7f   : > { %v335_v29 = vld [vmem:[#allocation6 + $0x158] sm:$0xff]  ;;  %v501_v30 = vld [vmem:[#allocation8 + $0xa8] sm:$0xff]  ;;  %v332_v33 = vld [vmem:[#allocation6 + $0x140] sm:$0xff]  ;;  %v1325_v35 = vpack.c.bf16 %v498_v28, %v496_v27 }
  0x80   : > { %1318 = vmatpush1.bf16.msra.mxu1 %v1317_v8  ;;  %v503_v31 = vld [vmem:[#allocation8 + $0xb8] sm:$0xff]  ;;  %v334_v34 = vld [vmem:[#allocation6 + $0x150] sm:$0xff]  ;;  %v1235_v36 = vpack.c.bf16 %v335_v29, %v333_v25  ;;  %v337_v37 = vld [vmem:[#allocation6 + $0x168] sm:$0xff] }
  0x81   : > { %1218 = vmatpush1.bf16.msra.mxu0 %v1217_v40  ;;  %1320 = vmatprep.subr.bf16.mxu1 %v1319_v13  ;;  %v1327_v38 = vpack.c.bf16 %v503_v31, %v501_v30  ;;  %v500_v39 = vld [vmem:[#allocation8 + $0xa0] sm:$0xff]  ;;  %v502_v40 = vld [vmem:[#allocation8 + $0xb0] sm:$0xff]  ;;  %v339_v41 = vld [vmem:[#allocation6 + $0x178] sm:$0xff] }
  0x82   : > { %1220 = vmatprep.subr.bf16.mxu0 %v1219_v44  ;;  %v505_v42 = vld [vmem:[#allocation8 + $0xc8] sm:$0xff]  ;;  %v507_v43 = vld [vmem:[#allocation8 + $0xd8] sm:$0xff]  ;;  %v1237_v44 = vpack.c.bf16 %v334_v34, %v332_v33  ;;  %v336_v45 = vld [vmem:[#allocation6 + $0x160] sm:$0xff]  ;;  %v1329_v47 = vpack.c.bf16 %v502_v40, %v500_v39  ;;  %v1239_v48 = vpack.c.bf16 %v339_v41, %v337_v37 }
  0x83   : > { %v338_v46 = vld [vmem:[#allocation6 + $0x170] sm:$0xff]  ;;  %v548_v49 = vld [vmem:[#allocation8 + $0x208] sm:$0xff]  ;;  %v1331_v50 = vpack.c.bf16 %v507_v43, %v505_v42  ;;  %v504_v51 = vld [vmem:[#allocation8 + $0xc0] sm:$0xff] }
  0x84   : > { %1322 = vmatpush1.bf16.msra.mxu1 %v1321_v23  ;;  %v506_v52 = vld [vmem:[#allocation8 + $0xd0] sm:$0xff]  ;;  %v550_v53 = vld [vmem:[#allocation8 + $0x218] sm:$0xff]  ;;  %v509_v54 = vld [vmem:[#allocation8 + $0xe8] sm:$0xff] }
  0x85   : > { %1222 = vmatpush1.bf16.msra.mxu0 %v1221_v56  ;;  %1324 = vmatprep.subr.bf16.mxu1 %v1323_v26  ;;  %v511_v55 = vld [vmem:[#allocation8 + $0xf8] sm:$0xff]  ;;  %v1241_v56 = vpack.c.bf16 %v338_v46, %v336_v45  ;;  %v1333_v57 = vpack.c.bf16 %v506_v52, %v504_v51  ;;  %v1243_v58 = vpack.c.bf16 %v550_v53, %v548_v49  ;;  %v547_v59 = vld [vmem:[#allocation8 + $0x200] sm:$0xff]  ;;  %v549_v60 = vld [vmem:[#allocation8 + $0x210] sm:$0xff] }
  0x86   : > { %1224 = vmatprep.subr.bf16.mxu0 %v1223_v61  ;;  %v552_v61 = vld [vmem:[#allocation8 + $0x228] sm:$0xff]  ;;  %v1335_v62 = vpack.c.bf16 %v511_v55, %v509_v54  ;;  %v554_v63 = vld [vmem:[#allocation8 + $0x238] sm:$0xff]  ;;  %v508_v1 = vld [vmem:[#allocation8 + $0xe0] sm:$0xff]  ;;  %v1245_v7 = vpack.c.bf16 %v549_v60, %v547_v59 }
  0x87   : > { %v510_v2 = vld [vmem:[#allocation8 + $0xf0] sm:$0xff]  ;;  %v513_v3 = vld [vmem:[#allocation8 + $0x108] sm:$0xff]  ;;  %v515_v4 = vld [vmem:[#allocation8 + $0x118] sm:$0xff]  ;;  %v1247_v8 = vpack.c.bf16 %v554_v63, %v552_v61 }
  0x88   : > { %1326 = vmatpush1.bf16.msra.mxu1 %v1325_v35  ;;  %v284_v5 = vld [vmem:[%s1907_s12] sm:$0xff]  ;;  %v553_v10 = vld [vmem:[#allocation8 + $0x230] sm:$0xff]  ;;  %v1337_v12 = vpack.c.bf16 %v510_v2, %v508_v1  ;;  %v558_v13 = vld [vmem:[#allocation8 + $0x258] sm:$0xff]  ;;  %v1339_v14 = vpack.c.bf16 %v515_v4, %v513_v3 }
  0x89   : > { %1226 = vmatpush1.bf16.msra.mxu0 %v1225_v6  ;;  %1328 = vmatprep.subr.bf16.mxu1 %v1327_v38  ;;  %v287_v6 = vld [vmem:[%s1907_s12 + $0x18] sm:$0xff]  ;;  %v551_v9 = vld [vmem:[#allocation8 + $0x220] sm:$0xff]  ;;  %v514_v16 = vld [vmem:[#allocation8 + $0x110] sm:$0xff] }
  0x8a   : > { %1228 = vmatprep.subr.bf16.mxu0 %v1227_v11  ;;  %v556_v11 = vld [vmem:[#allocation8 + $0x248] sm:$0xff]  ;;  %v512_v15 = vld [vmem:[#allocation8 + $0x100] sm:$0xff]  ;;  %v519_v18 = vld [vmem:[#allocation8 + $0x138] sm:$0xff]  ;;  %v1249_v21 = vpack.c.bf16 %v553_v10, %v551_v9 }
  0x8b   : > { %v517_v17 = vld [vmem:[#allocation8 + $0x128] sm:$0xff]  ;;  %v286_v19 = vld [vmem:[%s1907_s12 + $0x10] sm:$0xff]  ;;  %v1251_v22 = vpack.c.bf16 %v558_v13, %v556_v11  ;;  %v555_v23 = vld [vmem:[#allocation8 + $0x240] sm:$0xff]  ;;  %v1341_v26 = vpack.c.bf16 %v514_v16, %v512_v15 }
  0x8c   : > { %1330 = vmatpush1.bf16.msra.mxu1 %v1329_v47  ;;  %v560_v25 = vld [vmem:[#allocation8 + $0x268] sm:$0xff]  ;;  %v562_v27 = vld [vmem:[#allocation8 + $0x278] sm:$0xff]  ;;  %v1343_v28 = vpack.c.bf16 %v519_v18, %v517_v17  ;;  %v516_v29 = vld [vmem:[#allocation8 + $0x120] sm:$0xff] }
  0x8d   : > { %1230 = vmatpush1.bf16.msra.mxu0 %v1229_v20  ;;  %1332 = vmatprep.subr.bf16.mxu1 %v1331_v50  ;;  %v289_v20 = vld [vmem:[%s1907_s12 + $0x28] sm:$0xff]  ;;  %v518_v30 = vld [vmem:[#allocation8 + $0x130] sm:$0xff]  ;;  %v288_v33 = vld [vmem:[%s1907_s12 + $0x20] sm:$0xff] }
  0x8e   : > { %1232 = vmatprep.subr.bf16.mxu0 %v1231_v24  ;;  %v557_v24 = vld [vmem:[#allocation8 + $0x250] sm:$0xff]  ;;  %v521_v31 = vld [vmem:[#allocation8 + $0x148] sm:$0xff]  ;;  %v291_v34 = vld [vmem:[%s1907_s12 + $0x38] sm:$0xff]  ;;  %v1345_v40 = vpack.c.bf16 %v518_v30, %v516_v29 }
  0x8f   : > { %v1253_v35 = vpack.c.bf16 %v557_v24, %v555_v23  ;;  %v559_v37 = vld [vmem:[#allocation8 + $0x260] sm:$0xff]  ;;  %v561_v38 = vld [vmem:[#allocation8 + $0x270] sm:$0xff]  ;;  %v564_v39 = vld [vmem:[#allocation8 + $0x288] sm:$0xff] }
  0x90   : > { %1334 = vmatpush1.bf16.msra.mxu1 %v1333_v57  ;;  %v566_v41 = vld [vmem:[#allocation8 + $0x298] sm:$0xff]  ;;  %v520_v43 = vld [vmem:[#allocation8 + $0x140] sm:$0xff]  ;;  %v525_v45 = vld [vmem:[#allocation8 + $0x168] sm:$0xff] }
  0x91   : > { %1234 = vmatpush1.bf16.msra.mxu0 %v1233_v32  ;;  %1336 = vmatprep.subr.bf16.mxu1 %v1335_v62  ;;  %v523_v32 = vld [vmem:[#allocation8 + $0x158] sm:$0xff]  ;;  %v290_v47 = vld [vmem:[%s1907_s12 + $0x30] sm:$0xff]  ;;  %v1259_v49 = vpack.c.bf16 %v566_v41, %v564_v39  ;;  %v563_v50 = vld [vmem:[#allocation8 + $0x280] sm:$0xff] }
  0x92   : > { %1236 = vmatprep.subr.bf16.mxu0 %v1235_v36  ;;  %v1255_v36 = vpack.c.bf16 %v562_v27, %v560_v25  ;;  %v1347_v42 = vpack.c.bf16 %v523_v32, %v521_v31  ;;  %v527_v46 = vld [vmem:[#allocation8 + $0x178] sm:$0xff]  ;;  %v565_v51 = vld [vmem:[#allocation8 + $0x290] sm:$0xff]  ;;  %v568_v52 = vld [vmem:[#allocation8 + $0x2a8] sm:$0xff] }
  0x93   : > { %v570_v54 = vld [vmem:[#allocation8 + $0x2b8] sm:$0xff]  ;;  %v1351_v55 = vpack.c.bf16 %v527_v46, %v525_v45  ;;  %v526_v57 = vld [vmem:[#allocation8 + $0x170] sm:$0xff]  ;;  %v567_v60 = vld [vmem:[#allocation8 + $0x2a0] sm:$0xff] }
  0x94   : > { %1338 = vmatpush1.bf16.msra.mxu1 %v1337_v12  ;;  %v1263_v59 = vpack.c.bf16 %v570_v54, %v568_v52  ;;  %v569_v61 = vld [vmem:[#allocation8 + $0x2b0] sm:$0xff]  ;;  %v572_v63 = vld [vmem:[#allocation8 + $0x2c8] sm:$0xff]  ;;  %v574_v1 = vld [vmem:[#allocation8 + $0x2d8] sm:$0xff] }
  0x95   : > { %1238 = vmatpush1.bf16.msra.mxu0 %v1237_v44  ;;  %1340 = vmatprep.subr.bf16.mxu1 %v1339_v14  ;;  %v522_v44 = vld [vmem:[#allocation8 + $0x150] sm:$0xff]  ;;  %v1265_v2 = vpack.c.bf16 %v569_v61, %v567_v60  ;;  %v1267_v3 = vpack.c.bf16 %v574_v1, %v572_v63  ;;  %v571_v4 = vld [vmem:[#allocation8 + $0x2c0] sm:$0xff]  ;;  %v580_v12 = vld [vmem:[#allocation8 + $0x308] sm:$0xff] }
  0x96   : > { %1240 = vmatprep.subr.bf16.mxu0 %v1239_v48  ;;  %v1257_v48 = vpack.c.bf16 %v561_v38, %v559_v37  ;;  %v1349_v53 = vpack.c.bf16 %v522_v44, %v520_v43  ;;  %v575_v10 = vld [vmem:[#allocation8 + $0x2e0] sm:$0xff]  ;;  %v577_v11 = vld [vmem:[#allocation8 + $0x2f0] sm:$0xff]  ;;  %v582_v13 = vld [vmem:[#allocation8 + $0x318] sm:$0xff] }
  0x97   : > { %v1273_v14 = vpack.c.bf16 %v577_v11, %v575_v10  ;;  %v1275_v15 = vpack.c.bf16 %v582_v13, %v580_v12  ;;  %v579_v16 = vld [vmem:[#allocation8 + $0x300] sm:$0xff]  ;;  %v581_v17 = vld [vmem:[#allocation8 + $0x310] sm:$0xff]  ;;  %v584_v18 = vld [vmem:[#allocation8 + $0x328] sm:$0xff] }
  0x98   : > { %1342 = vmatpush1.bf16.msra.mxu1 %v1341_v26  ;;  %v585_v23 = vld [vmem:[#allocation8 + $0x330] sm:$0xff]  ;;  %v588_v24 = vld [vmem:[#allocation8 + $0x348] sm:$0xff]  ;;  %v590_v25 = vld [vmem:[#allocation8 + $0x358] sm:$0xff] }
  0x99   : > { %1242 = vmatpush1.bf16.msra.mxu0 %v1241_v56  ;;  %1344 = vmatprep.subr.bf16.mxu1 %v1343_v28  ;;  %v524_v56 = vld [vmem:[#allocation8 + $0x160] sm:$0xff]  ;;  %v1283_v27 = vpack.c.bf16 %v590_v25, %v588_v24  ;;  %v589_v29 = vld [vmem:[#allocation8 + $0x350] sm:$0xff]  ;;  %v592_v30 = vld [vmem:[#allocation8 + $0x368] sm:$0xff]  ;;  %v1931_v25 = vshrl.u32 %v274_v0, 7 }
  0x9a   : > { %1244 = vmatprep.subr.bf16.mxu0 %v1243_v58  ;;  %v1261_v58 = vpack.c.bf16 %v565_v51, %v563_v50  ;;  %v1353_v62 = vpack.c.bf16 %v526_v57, %v524_v56  ;;  %v587_v28 = vld [vmem:[#allocation8 + $0x340] sm:$0xff]  ;;  %v594_v31 = vld [vmem:[#allocation8 + $0x378] sm:$0xff]  ;;  %v597_v41 = vld [vmem:[#allocation8 + $0x390] sm:$0xff] }
  0x9b   : > { %v1285_v32 = vpack.c.bf16 %v589_v29, %v587_v28  ;;  %v598_v37 = vld [vmem:[#allocation8 + $0x398] sm:$0xff]  ;;  %v529_v43 = vld [vmem:[#allocation8 + $0x188] sm:$0xff]  ;;  %v528_v46 = vld [vmem:[#allocation8 + $0x180] sm:$0xff]  ;;  %v348_v28 = vsub.s32 1, %v1931_v25 }
  0x9c   : > { %430 = vmatmul.mubr.f32.vlgmr.msra.gmra.mrb[0].mxu0 %v284_v5  ;;  %1346 = vmatpush1.bf16.msra.mxu1 %v1345_v40  ;;  %v573_v5 = vld [vmem:[#allocation8 + $0x2d0] sm:$0xff]  ;;  %v595_v40 = vld [vmem:[#allocation8 + $0x380] sm:$0xff]  ;;  %v531_v44 = vld [vmem:[#allocation8 + $0x198] sm:$0xff] }
  0x9d   : > { %1184 = vmatprep.mubr.msk.f32.mxu0 %vm352_vm1, %v287_v6  ;;  %1246 = vmatpush1.bf16.msra.mxu0 %v1245_v7  ;;  %v576_v6 = vld [vmem:[#allocation8 + $0x2e8] sm:$0xff]  ;;  %v578_v7 = vld [vmem:[#allocation8 + $0x2f8] sm:$0xff]  ;;  %v1355_v45 = vpack.c.bf16 %v531_v44, %v529_v43  ;;  %v599_v52 = vld [vmem:[#allocation8 + $0x3a0] sm:$0xff] }
  0x9e   : > { %1248 = vmatprep.subr.bf16.mxu0 %v1247_v8  ;;  %1348 = vmatprep.subr.bf16.mxu1 %v1347_v42  ;;  %v1269_v8 = vpack.c.bf16 %v573_v5, %v571_v4  ;;  %v1271_v9 = vpack.c.bf16 %v578_v7, %v576_v6  ;;  %v1293_v42 = vpack.c.bf16 %v597_v41, %v595_v40  ;;  %v602_v50 = vld [vmem:[#allocation8 + $0x3b8] sm:$0xff]  ;;  %v604_v61 = vld [vmem:[#allocation8 + $0x3c8] sm:$0xff]  ;;  %v603_v1 = vld [vmem:[#allocation8 + $0x3c0] sm:$0xff] }
  0x9f   : > { %v535_v56 = vld [vmem:[#allocation8 + $0x1b8] sm:$0xff]  ;;  %v537_v4 = vld [vmem:[#allocation8 + $0x1c8] sm:$0xff]  ;;  %v536_v7 = vld [vmem:[#allocation8 + $0x1c0] sm:$0xff] }
  0xa0   : > { %436 = vmatmul.mubr.f32.gmra.mrb[2].mxu0 %v286_v19  ;;  %1350 = vmatpush1.bf16.msra.mxu1 %v1349_v53  ;;  %v586_v19 = vld [vmem:[#allocation8 + $0x338] sm:$0xff]  ;;  %v601_v53 = vld [vmem:[#allocation8 + $0x3b0] sm:$0xff]  ;;  %v608_v10 = vld [vmem:[#allocation8 + $0x3e8] sm:$0xff] }
  0xa1   : > { %1185 = vmatprep.mubr.msk.f32.mxu0 %vm352_vm1, %v289_v20  ;;  %1250 = vmatpush1.bf16.msra.mxu0 %v1249_v21  ;;  %v1277_v20 = vpack.c.bf16 %v581_v17, %v579_v16  ;;  %v1279_v21 = vpack.c.bf16 %v586_v19, %v584_v18  ;;  %v1297_v54 = vpack.c.bf16 %v601_v53, %v599_v52  ;;  %v539_v5 = vld [vmem:[#allocation8 + $0x1d8] sm:$0xff]  ;;  %v607_v13 = vld [vmem:[#allocation8 + $0x3e0] sm:$0xff]  ;;  %v541_v16 = vld [vmem:[#allocation8 + $0x1e8] sm:$0xff] }
  0xa2   : > { %1252 = vmatprep.subr.bf16.mxu0 %v1251_v22  ;;  %1352 = vmatprep.subr.bf16.mxu1 %v1351_v55  ;;  %v583_v22 = vld [vmem:[#allocation8 + $0x320] sm:$0xff]  ;;  %v533_v55 = vld [vmem:[#allocation8 + $0x1a8] sm:$0xff]  ;;  %v1363_v6 = vpack.c.bf16 %v539_v5, %v537_v4  ;;  %v610_v11 = vld [vmem:[#allocation8 + $0x3f8] sm:$0xff] }
  0xa3   : > { %v1281_v26 = vpack.c.bf16 %v585_v23, %v583_v22  ;;  %v1359_v57 = vpack.c.bf16 %v535_v56, %v533_v55  ;;  %v1303_v12 = vpack.c.bf16 %v610_v11, %v608_v10  ;;  %v543_v17 = vld [vmem:[#allocation8 + $0x1f8] sm:$0xff]  ;;  %v540_v19 = vld [vmem:[#allocation8 + $0x1e0] sm:$0xff]  ;;  %v838_v22 = vld [vmem:[#allocation8 + $0x408] sm:$0xff] }
  0xa4   : > { %442 = vmatmul.mubr.f32.gmra.mrb[4].mxu0 %v288_v33  ;;  %1354 = vmatpush1.bf16.msra.mxu1 %v1353_v62  ;;  %v1287_v33 = vpack.c.bf16 %v594_v31, %v592_v30  ;;  %v606_v62 = vld [vmem:[#allocation8 + $0x3d8] sm:$0xff]  ;;  %v1367_v18 = vpack.c.bf16 %v543_v17, %v541_v16  ;;  %v471_v0 = vld [vmem:[#allocation2 + $0x8] sm:$0x80]  ;;  %v837_v40 = vld [vmem:[#allocation8 + $0x400] sm:$0xff] }
  0xa5   : > { %1186 = vmatprep.mubr.msk.f32.mxu0 %vm352_vm1, %v291_v34  ;;  %1254 = vmatpush1.bf16.msra.mxu0 %v1253_v35  ;;  %v591_v34 = vld [vmem:[#allocation8 + $0x360] sm:$0xff]  ;;  %v593_v35 = vld [vmem:[#allocation8 + $0x370] sm:$0xff]  ;;  %v1299_v63 = vpack.c.bf16 %v606_v62, %v604_v61  ;;  %v840_v23 = vld [vmem:[#allocation8 + $0x418] sm:$0xff] }
  0xa6   : > { %1256 = vmatprep.subr.bf16.mxu0 %v1255_v36  ;;  %v596_v36 = vld [vmem:[#allocation8 + $0x388] sm:$0xff]  ;;  %v1289_v38 = vpack.c.bf16 %v593_v35, %v591_v34  ;;  %1356 = vmatprep.subr.bf16.mxu1 %v1355_v45  ;;  %v1371_v24 = vpack.c.bf16 %v840_v23, %v838_v22  ;;  %v470_v35 = vld [vmem:[#allocation2] sm:$0x80]  ;;  %v839_v41 = vld [vmem:[#allocation8 + $0x410] sm:$0xff] }
  0xa7   : > { %v1291_v39 = vpack.c.bf16 %v598_v37, %v596_v36  ;;  %v711_v44 = vrot.slane %v470_v35, 7  ;;  %v841_v56 = vld [vmem:[#allocation8 + $0x420] sm:$0xff]  ;;  %v846_v62 = vld [vmem:[#allocation8 + $0x448] sm:$0xff]  ;;  %v847_v11 = vld [vmem:[#allocation8 + $0x450] sm:$0xff] }
  0xa8   : > { %448 = vmatmul.mubr.f32.gmra.mrb[6].mxu0 %v290_v47  ;;  %v530_v47 = vld [vmem:[#allocation8 + $0x190] sm:$0xff]  ;;  %v845_v10 = vld [vmem:[#allocation8 + $0x440] sm:$0xff]  ;;  %v852_v16 = vld [vmem:[#allocation8 + $0x478] sm:$0xff] }
  0xa9   : > { %1258 = vmatpush1.bf16.msra.mxu0 %v1257_v48  ;;  %v1357_v48 = vpack.c.bf16 %v530_v47, %v528_v46  ;;  %v842_v46 = vld [vmem:[#allocation8 + $0x428] sm:$0xff]  ;;  %v844_v47 = vld [vmem:[#allocation8 + $0x438] sm:$0xff] }
  0xaa   : > { %1260 = vmatprep.subr.bf16.mxu0 %v1259_v49  ;;  %v600_v49 = vld [vmem:[#allocation8 + $0x3a8] sm:$0xff]  ;;  %v1375_v55 = vpack.c.bf16 %v844_v47, %v842_v46  ;;  %v860_v46 = vld [vmem:[#allocation8 + $0x4b8] sm:$0xff] }
  0xab   : > { %v1295_v51 = vpack.c.bf16 %v602_v50, %v600_v49  ;;  %1358 = vmatpush1.bf16.msra.mxu1 %v1357_v48  ;;  %v854_v35 = vld [vmem:[#allocation8 + $0x488] sm:$0xff] }
  0xac   : > { %1360 = vmatprep.subr.bf16.mxu1 %v1359_v57  ;;  %v843_v57 = vld [vmem:[#allocation8 + $0x430] sm:$0xff] }
  0xad   : > { %1262 = vmatpush1.bf16.msra.mxu0 %v1261_v58  ;;  %v532_v58 = vld [vmem:[#allocation8 + $0x1a0] sm:$0xff]  ;;  %v1377_v5 = vpack.c.bf16 %v843_v57, %v841_v56  ;;  %v862_v57 = vld [vmem:[#allocation8 + $0x4c8] sm:$0xff] }
  0xae   : > { %1264 = vmatprep.subr.bf16.mxu0 %v1263_v59  ;;  %v534_v59 = vld [vmem:[#allocation8 + $0x1b0] sm:$0xff] }
  0xaf   : > { %v1361_v60 = vpack.c.bf16 %v534_v59, %v532_v58 }
  0xb1   : > { %1266 = vmatpush1.bf16.msra.mxu0 %v1265_v2  ;;  %v605_v2 = vld [vmem:[#allocation8 + $0x3d0] sm:$0xff]  ;;  %1362 = vmatpush1.bf16.msra.mxu1 %v1361_v60 }
  0xb2   : > { %1268 = vmatprep.subr.bf16.mxu0 %v1267_v3  ;;  %v1301_v3 = vpack.c.bf16 %v605_v2, %v603_v1  ;;  %1364 = vmatprep.subr.bf16.mxu1 %v1363_v6 }
  0xb5   : > { %1270 = vmatpush1.bf16.msra.mxu0 %v1269_v8  ;;  %v538_v8 = vld [vmem:[#allocation8 + $0x1d0] sm:$0xff] }
  0xb6   : > { %1272 = vmatprep.subr.bf16.mxu0 %v1271_v9  ;;  %v1365_v9 = vpack.c.bf16 %v538_v8, %v536_v7 }
  0xb8   : > { %1366 = vmatpush1.bf16.msra.mxu1 %v1365_v9 }
  0xb9   : > { %1274 = vmatpush1.bf16.msra.mxu0 %v1273_v14  ;;  %v609_v14 = vld [vmem:[#allocation8 + $0x3f0] sm:$0xff]  ;;  %1368 = vmatprep.subr.bf16.mxu1 %v1367_v18 }
  0xba   : > { %1276 = vmatprep.subr.bf16.mxu0 %v1275_v15  ;;  %v1305_v15 = vpack.c.bf16 %v609_v14, %v607_v13 }
  0xbd   : > { %1278 = vmatpush1.bf16.msra.mxu0 %v1277_v20  ;;  %v542_v20 = vld [vmem:[#allocation8 + $0x1f0] sm:$0xff] }
  0xbe   : > { %1280 = vmatprep.subr.bf16.mxu0 %v1279_v21  ;;  %v1369_v21 = vpack.c.bf16 %v542_v20, %v540_v19 }
  0xc0   : > { %1370 = vmatpush1.bf16.msra.mxu1 %v1369_v21 }
  0xc1   : > { %1282 = vmatpush1.bf16.msra.mxu0 %v1281_v26  ;;  %1372 = vmatprep.subr.bf16.mxu1 %v1371_v24  ;;  %v344_v26 = vsub.s32 0, %v1931_v25 }
  0xc2   : > { %1284 = vmatprep.subr.bf16.mxu0 %v1283_v27  ;;  %v340_v27 = vld [vmem:[%s2083_s2] sm:$0x3] }
  0xc3   : > { %v345_v29 = vrot.slane %v340_v27, %v344_v26  ;;  %v1942_v30 = vrot.slane %v340_v27, %v348_v28  ;;  %v1381_v27 = vpack.c.bf16 %v847_v11, %v845_v10  ;;  %v867_v10 = vld [vmem:[#allocation8 + $0x4f0] sm:$0xff]  ;;  %v870_v11 = vld [vmem:[#allocation8 + $0x508] sm:$0xff] }
  0xc5   : > { %1286 = vmatpush1.bf16.msra.mxu0 %v1285_v32 }
  0xc6   : > { %1288 = vmatprep.subr.bf16.mxu0 %v1287_v33 }
  0xc9   : > { %1290 = vmatpush1.bf16.msra.mxu0 %v1289_v38 }
  0xca   : > { %1292 = vmatprep.subr.bf16.mxu0 %v1291_v39  ;;  %v714_v39 = vrot.slane %v471_v0, 7  ;;  %v851_v0 = vld [vmem:[#allocation8 + $0x470] sm:$0xff] }
  0xcd   : > { %1294 = vmatpush1.bf16.msra.mxu0 %v1293_v42 }
  0xce   : > { %1296 = vmatprep.subr.bf16.mxu0 %v1295_v51  ;;  %v1373_v51 = vpack.c.bf16 %v839_v41, %v837_v40 }
  0xd1   : > { %1298 = vmatpush1.bf16.msra.mxu0 %v1297_v54 }
  0xd2   : > { %1300 = vmatprep.subr.bf16.mxu0 %v1299_v63  ;;  %v848_v63 = vld [vmem:[#allocation8 + $0x458] sm:$0xff] }
  0xd3   : > { %v1379_v9 = vpack.c.bf16 %v848_v63, %v846_v62 }
  0xd5   : > { %1302 = vmatpush1.bf16.msra.mxu0 %v1301_v3 }
  0xd6   : > { %1304 = vmatprep.subr.bf16.mxu0 %v1303_v12 }
  0xd9   : > { %1306 = vmatpush1.bf16.msra.mxu0 %v1305_v15  ;;  %v850_v15 = vld [vmem:[#allocation8 + $0x468] sm:$0xff] }
 0x16f   : > { %v431_v31 = vpop.f32.mrb[0].mxu0 }
 0x170   : > { %v432_v32 = vadd.f32 %v431_v31, %v345_v29  ;;  %v433_v33 = vpop.f32.mrb[1].mxu0 }
 0x171   : > { %v434_v34 = vadd.f32 %v433_v33, %v1942_v30  ;;  %v849_v33 = vld [vmem:[#allocation8 + $0x460] sm:$0xff] }
 0x172   : > { %v454_v36 = vmax.f32 %v432_v32, 0.0  ;;  %v1383_v32 = vpack.c.bf16 %v852_v16, %v850_v15  ;;  %v869_v15 = vld [vmem:[#allocation8 + $0x500] sm:$0xff]  ;;  %v871_v16 = vld [vmem:[#allocation8 + $0x510] sm:$0xff] }
 0x173   : > { %v455_v37 = vmax.f32 %v434_v34, 0.0  ;;  %v437_v38 = vpop.f32.mrb[2].mxu0 }
 0x174   : > { %462 = vst [vmem:[#allocation2 + $0x10] sm:$0xff] %v454_v36  ;;  %v438_v42 = vadd.f32 %v437_v38, %v345_v29  ;;  %v439_v43 = vpop.f32.mrb[3].mxu0  ;;  %v712_v45 = vrot.slane %v454_v36, 7 }
 0x175   : > { %463 = vst [vmem:[#allocation2 + $0x18] sm:$0xff] %v455_v37  ;;  %v440_v48 = vadd.f32 %v439_v43, %v1942_v30  ;;  %675 = vmatprep.mubr.f32.mxu0 %v455_v37  ;;  %v715_v49 = vrot.slane %v455_v37, 7  ;;  %v855_v43 = vld [vmem:[#allocation8 + $0x490] sm:$0xff] }
 0x176   : > { %v1946_v50 = vmax.f32 %v438_v42, 0.0  ;;  %676 = vmatmul.mubr.f32.vlgmr.msra.gmra.mrb[8].mxu0 %v454_v36  ;;  %v713_v60 = vsel %vm710_vm2, %v711_v44, %v712_v45  ;;  %v856_v36 = vld [vmem:[#allocation8 + $0x498] sm:$0xff]  ;;  %v853_v42 = vld [vmem:[#allocation8 + $0x480] sm:$0xff] }
 0x177   : > { %v1948_v52 = vmax.f32 %v440_v48, 0.0  ;;  %v443_v53 = vpop.f32.mrb[4].mxu0  ;;  %v716_v54 = vsel %vm710_vm2, %v714_v39, %v715_v49  ;;  %v1385_v39 = vpack.c.bf16 %v851_v0, %v849_v33  ;;  %v1387_v41 = vpack.c.bf16 %v856_v36, %v854_v35  ;;  %v877_v33 = vld [vmem:[#allocation8 + $0x540] sm:$0xff]  ;;  %v879_v0 = vld [vmem:[#allocation8 + $0x550] sm:$0xff]  ;;  %v882_v35 = vld [vmem:[#allocation8 + $0x568] sm:$0xff] }
 0x178   : > { %v444_v58 = vadd.f32 %v443_v53, %v345_v29  ;;  %v445_v59 = vpop.f32.mrb[5].mxu0  ;;  %801 = vmatprep.mubr.f32.mxu1 %v716_v54  ;;  %v717_v61 = vrot.slane %v1946_v50, 7  ;;  %v913_v17 = vrot.slane %v1946_v50, 1  ;;  %v1389_v48 = vpack.c.bf16 %v855_v43, %v853_v42  ;;  %v857_v53 = vld [vmem:[#allocation8 + $0x4a0] sm:$0xff]  ;;  %v859_v54 = vld [vmem:[#allocation8 + $0x4b0] sm:$0xff]  ;;  %v884_v36 = vld [vmem:[#allocation8 + $0x578] sm:$0xff] }
 0x179   : > { %v446_v1 = vadd.f32 %v445_v59, %v1942_v30  ;;  %802 = vmatmul.mubr.f32.vlgmr.msra.gmra.mrb[0].mxu1 %v713_v60  ;;  %v719_v2 = vrot.slane %v1948_v52, 7  ;;  %681 = vmatprep.mubr.f32.mxu0 %v1948_v52  ;;  %v916_v21 = vrot.slane %v1948_v52, 1  ;;  %v1393_v62 = vpack.c.bf16 %v859_v54, %v857_v53  ;;  %v881_v42 = vld [vmem:[#allocation8 + $0x560] sm:$0xff]  ;;  %v883_v43 = vld [vmem:[#allocation8 + $0x570] sm:$0xff]  ;;  %v890_v53 = vld [vmem:[#allocation8 + $0x5a8] sm:$0xff] }
 0x17a   : > { %v1956_v3 = vmax.f32 %v444_v58, 0.0  ;;  %1374 = vmatpush1.bf16.msra.mxu1 %v1373_v51  ;;  %v718_v4 = vsel %vm710_vm2, %v712_v45, %v717_v61  ;;  %682 = vmatmul.mubr.f32.gmra.mrb[10].mxu0 %v1946_v50  ;;  %v858_v45 = vld [vmem:[#allocation8 + $0x4a8] sm:$0xff]  ;;  %v864_v58 = vld [vmem:[#allocation8 + $0x4d8] sm:$0xff]  ;;  %v1405_v52 = vpack.c.bf16 %v871_v16, %v869_v15 }
 0x17b   : > { %v1960_v6 = vmax.f32 %v446_v1, 0.0  ;;  %v449_v7 = vpop.f32.mrb[6].mxu0  ;;  %v720_v8 = vsel %vm710_vm2, %v715_v49, %v719_v2  ;;  %1376 = vmatprep.subr.bf16.mxu1 %v1375_v55  ;;  %v1391_v51 = vpack.c.bf16 %v860_v46, %v858_v45  ;;  %v1395_v1 = vpack.c.bf16 %v864_v58, %v862_v57  ;;  %v886_v45 = vld [vmem:[#allocation8 + $0x588] sm:$0xff]  ;;  %v888_v46 = vld [vmem:[#allocation8 + $0x598] sm:$0xff]  ;;  %v889_v57 = vld [vmem:[#allocation8 + $0x5a0] sm:$0xff] }
 0x17c   : > { %v450_v12 = vadd.f32 %v449_v7, %v345_v29  ;;  %v451_v13 = vpop.f32.mrb[7].mxu0  ;;  %807 = vmatprep.mubr.f32.mxu1 %v720_v8  ;;  %v721_v14 = vrot.slane %v1956_v3, 7  ;;  %v918_v18 = vrot.slane %v1956_v3, 1  ;;  %v827_v47 = vld [vmem:[#allocation2 + $0x18] sm:$0xfe]  ;;  %v891_v58 = vld [vmem:[#allocation8 + $0x5b0] sm:$0xff] }
 0x17d   : > { %v452_v19 = vadd.f32 %v451_v13, %v1942_v30  ;;  %808 = vmatmul.mubr.f32.gmra.mrb[2].mxu1 %v718_v4  ;;  %v723_v20 = vrot.slane %v1960_v6, 7  ;;  %687 = vmatprep.mubr.f32.mxu0 %v1960_v6  ;;  %v920_v22 = vrot.slane %v1960_v6, 1  ;;  %v915_v60 = vrot.slane %v827_v47, 1  ;;  %v866_v4 = vld [vmem:[#allocation8 + $0x4e8] sm:$0xff]  ;;  %v892_v54 = vld [vmem:[#allocation8 + $0x5b8] sm:$0xff] }
 0x17e   : > { %v1971_v23 = vmax.f32 %v450_v12, 0.0  ;;  %1378 = vmatpush1.bf16.msra.mxu1 %v1377_v5  ;;  %v722_v24 = vsel %vm710_vm2, %v717_v61, %v721_v14  ;;  %688 = vmatmul.mubr.f32.gmra.mrb[12].mxu0 %v1956_v3  ;;  %v1978_v29 = vsel %vm911_vm3, %v913_v17, %v918_v18  ;;  %v863_v3 = vld [vmem:[#allocation8 + $0x4d0] sm:$0xff]  ;;  %v868_v5 = vld [vmem:[#allocation8 + $0x4f8] sm:$0xff]  ;;  %v1417_v47 = vpack.c.bf16 %v883_v43, %v881_v42 }
 0x17f   : > { %v1980_v30 = vmax.f32 %v452_v19, 0.0  ;;  %v724_v31 = vsel %vm710_vm2, %v719_v2, %v723_v20  ;;  %1380 = vmatprep.subr.bf16.mxu1 %v1379_v9  ;;  %v1986_v34 = vsel %vm911_vm3, %v916_v21, %v920_v22  ;;  %v861_v2 = vld [vmem:[#allocation8 + $0x4c0] sm:$0xff]  ;;  %v917_v6 = vsel %vm911_vm3, %v915_v60, %v916_v21  ;;  %v872_v12 = vld [vmem:[#allocation8 + $0x518] sm:$0xff] }
 0x180   : > { %468 = vst [vmem:[#allocation2 + $0x40] sm:$0xff] %v1971_v23  ;;  %813 = vmatprep.mubr.f32.mxu1 %v724_v31  ;;  %v922_v37 = vrot.slane %v1971_v23, 1  ;;  %v1397_v7 = vpack.c.bf16 %v863_v3, %v861_v2  ;;  %v1399_v8 = vpack.c.bf16 %v868_v5, %v866_v4  ;;  %v865_v9 = vld [vmem:[#allocation8 + $0x4e0] sm:$0xff]  ;;  %v876_v19 = vld [vmem:[#allocation8 + $0x538] sm:$0xff]  ;;  %v898_v2 = vld [vmem:[#allocation8 + $0x5e8] sm:$0xff] }
 0x181   : > { %469 = vst [vmem:[#allocation2 + $0x48] sm:$0xff] %v1980_v30  ;;  %814 = vmatmul.mubr.f32.gmra.mrb[4].mxu1 %v722_v24  ;;  %693 = vmatprep.mubr.f32.mxu0 %v1980_v30  ;;  %v924_v38 = vrot.slane %v1980_v30, 1  ;;  %v1401_v13 = vpack.c.bf16 %v867_v10, %v865_v9  ;;  %v873_v21 = vld [vmem:[#allocation8 + $0x520] sm:$0xff]  ;;  %v878_v24 = vld [vmem:[#allocation8 + $0x548] sm:$0xff]  ;;  %v896_v60 = vld [vmem:[#allocation8 + $0x5d8] sm:$0xff] }
 0x182   : > { %1382 = vmatpush1.bf16.msra.mxu1 %v1381_v27  ;;  %694 = vmatmul.mubr.f32.gmra.mrb[14].mxu0 %v1971_v23  ;;  %v1997_v40 = vsel %vm911_vm3, %v918_v18, %v922_v37  ;;  %v874_v18 = vld [vmem:[#allocation8 + $0x528] sm:$0xff]  ;;  %v880_v27 = vld [vmem:[#allocation8 + $0x558] sm:$0xff]  ;;  %v1035_v30 = vld [vmem:[%s2085_s4] sm:$0x3] }
 0x183   : > { %1384 = vmatprep.subr.bf16.mxu1 %v1383_v32  ;;  %v2002_v44 = vsel %vm911_vm3, %v920_v22, %v924_v38  ;;  %v875_v22 = vld [vmem:[#allocation8 + $0x530] sm:$0xff]  ;;  %v1411_v32 = vpack.c.bf16 %v880_v27, %v878_v24  ;;  %v900_v3 = vld [vmem:[#allocation8 + $0x5f8] sm:$0xff] }
 0x184   : > { %v1409_v31 = vpack.c.bf16 %v875_v22, %v873_v21  ;;  %v1431_v5 = vpack.c.bf16 %v900_v3, %v898_v2 }
 0x186   : > { %1386 = vmatpush1.bf16.msra.mxu1 %v1385_v39  ;;  %v1413_v39 = vpack.c.bf16 %v879_v0, %v877_v33 }
 0x187   : > { %v478_v49 = vld [vmem:[#allocation2 + $0x40] sm:$0x7f]  ;;  %1388 = vmatprep.subr.bf16.mxu1 %v1387_v41  ;;  %v1415_v41 = vpack.c.bf16 %v884_v36, %v882_v35 }
 0x188   : > { %v479_v55 = vld [vmem:[#allocation2 + $0x48] sm:$0x7f]  ;;  %v725_v56 = vrot.slane %v478_v49, 7  ;;  %v885_v49 = vld [vmem:[#allocation8 + $0x580] sm:$0xff] }
 0x189   : > { %v727_v59 = vrot.slane %v479_v55, 7 }
 0x18a   : > { %v726_v61 = vsel %vm710_vm2, %v721_v14, %v725_v56  ;;  %1390 = vmatpush1.bf16.msra.mxu1 %v1389_v48  ;;  %v1403_v14 = vpack.c.bf16 %v872_v12, %v870_v11  ;;  %v1419_v48 = vpack.c.bf16 %v888_v46, %v886_v45  ;;  %v1423_v56 = vpack.c.bf16 %v892_v54, %v890_v53  ;;  %v835_v12 = vld [vmem:[#allocation2 + $0x58] sm:$0x1] }
 0x18b   : > { %v728_v63 = vsel %vm710_vm2, %v723_v20, %v727_v59  ;;  %1392 = vmatprep.subr.bf16.mxu1 %v1391_v51  ;;  %v1407_v20 = vpack.c.bf16 %v876_v19, %v874_v18  ;;  %v887_v51 = vld [vmem:[#allocation8 + $0x590] sm:$0xff]  ;;  %v894_v59 = vld [vmem:[#allocation8 + $0x5c8] sm:$0xff] }
 0x18c   : > { %819 = vmatprep.mubr.f32.mxu1 %v728_v63  ;;  %v1421_v55 = vpack.c.bf16 %v887_v51, %v885_v49  ;;  %v893_v63 = vld [vmem:[#allocation8 + $0x5c0] sm:$0xff] }
 0x18d   : > { %820 = vmatmul.mubr.f32.gmra.mrb[6].mxu1 %v726_v61  ;;  %v1425_v61 = vpack.c.bf16 %v891_v58, %v889_v57 }
 0x18e   : > { %1002 = vmatprep.mubr.f32.mxu1 %v917_v6  ;;  %1394 = vmatpush1.bf16.msra.mxu1 %v1393_v62  ;;  %v1427_v62 = vpack.c.bf16 %v896_v60, %v894_v59  ;;  %v897_v6 = vld [vmem:[#allocation8 + $0x5e0] sm:$0xff] }
 0x18f   : > { %1396 = vmatprep.subr.bf16.mxu1 %v1395_v1  ;;  %v895_v1 = vld [vmem:[#allocation8 + $0x5d0] sm:$0xff] }
 0x190   : > { %v1429_v4 = vpack.c.bf16 %v895_v1, %v893_v63 }
 0x192   : > { %1398 = vmatpush1.bf16.msra.mxu1 %v1397_v7  ;;  %v899_v7 = vld [vmem:[#allocation8 + $0x5f0] sm:$0xff] }
 0x193   : > { %1400 = vmatprep.subr.bf16.mxu1 %v1399_v8  ;;  %v826_v8 = vld [vmem:[#allocation2 + $0x10] sm:$0xfe]  ;;  %v1433_v9 = vpack.c.bf16 %v899_v7, %v897_v6 }
 0x194   : > { %v912_v10 = vrot.slane %v826_v8, 1 }
 0x196   : > { %1402 = vmatpush1.bf16.msra.mxu1 %v1401_v13  ;;  %v914_v11 = vsel %vm911_vm3, %v912_v10, %v913_v17  ;;  %v928_v13 = vrot.slane %v835_v12, 1 }
 0x197   : > { %1404 = vmatprep.subr.bf16.mxu1 %v1403_v14  ;;  %v834_v14 = vld [vmem:[#allocation2 + $0x50] sm:$0x1] }
 0x198   : > { %v926_v15 = vrot.slane %v834_v14, 1  ;;  %v929_v16 = vsel %vm911_vm3, %v924_v38, %v928_v13  ;;  %v1040_v38 = vrot.slane %v1035_v30, %v344_v26 }
 0x19a   : > { %1406 = vmatpush1.bf16.msra.mxu1 %v1405_v52  ;;  %v927_v50 = vsel %vm911_vm3, %v922_v37, %v926_v15  ;;  %v1044_v37 = vrot.slane %v1035_v30, %v348_v28 }
 0x19b   : > { %1408 = vmatprep.subr.bf16.mxu1 %v1407_v20 }
 0x19e   : > { %1410 = vmatpush1.bf16.msra.mxu1 %v1409_v31 }
 0x19f   : > { %1412 = vmatprep.subr.bf16.mxu1 %v1411_v32 }
 0x1a2   : > { %1414 = vmatpush1.bf16.msra.mxu1 %v1413_v39 }
 0x1a3   : > { %1416 = vmatprep.subr.bf16.mxu1 %v1415_v41 }
 0x1a6   : > { %1418 = vmatpush1.bf16.msra.mxu1 %v1417_v47 }
 0x1a7   : > { %1420 = vmatprep.subr.bf16.mxu1 %v1419_v48 }
 0x1aa   : > { %1422 = vmatpush1.bf16.msra.mxu1 %v1421_v55 }
 0x1ab   : > { %1424 = vmatprep.subr.bf16.mxu1 %v1423_v56 }
 0x1ae   : > { %1426 = vmatpush1.bf16.msra.mxu1 %v1425_v61 }
 0x1af   : > { %1428 = vmatprep.subr.bf16.mxu1 %v1427_v62 }
 0x1b2   : > { %1430 = vmatpush1.bf16.msra.mxu1 %v1429_v4 }
 0x1b3   : > { %1432 = vmatprep.subr.bf16.mxu1 %v1431_v5 }
 0x1b6   : > { %1434 = vmatpush1.bf16.msra.mxu1 %v1433_v9 }
 0x1b9   : > { %1003 = vmatmul.mubr.f32.vlgmr.msra.gmra.mrb[0].mxu1 %v914_v11 }
 0x1ba   : > { %1008 = vmatprep.mubr.f32.mxu1 %v1986_v34 }
 0x1bd   : > { %1009 = vmatmul.mubr.f32.gmra.mrb[2].mxu1 %v1978_v29 }
 0x1be   : > { %1014 = vmatprep.mubr.f32.mxu1 %v2002_v44 }
 0x1c1   : > { %1015 = vmatmul.mubr.f32.gmra.mrb[4].mxu1 %v1997_v40 }
 0x1c2   : > { %1020 = vmatprep.mubr.f32.mxu1 %v929_v16 }
 0x1c5   : > { %1021 = vmatmul.mubr.f32.gmra.mrb[6].mxu1 %v927_v50 }
 0x249   : > { %v677_v17 = vpop.f32.mrb[8].mxu0 }
 0x24a   : > { %v679_v34 = vpop.f32.mrb[9].mxu0 }
 0x24d   : > { %v683_v29 = vpop.f32.mrb[10].mxu0 }
 0x24e   : > { %v685_v18 = vpop.f32.mrb[11].mxu0 }
 0x251   : > { %v689_v19 = vpop.f32.mrb[12].mxu0 }
 0x252   : > { %v691_v44 = vpop.f32.mrb[13].mxu0 }
 0x255   : > { %v695_v52 = vpop.f32.mrb[14].mxu0 }
 0x256   : > { %v697_v20 = vpop.f32.mrb[15].mxu0 }
 0x28c   : > { %v1004_v23 = vpop.f32.mrb[0].mxu1 }
 0x28d   : > { %v1435_v40 = vadd.f32 %v1004_v23, %v677_v17  ;;  %v1006_v21 = vpop.f32.mrb[1].mxu1 }
 0x28e   : > { %v1436_v22 = vadd.f32 %v1006_v21, %v679_v34 }
 0x28f   : > { %v1047_v24 = vadd.f32 %v1435_v40, %v1040_v38 }
 0x290   : > { %v1048_v27 = vadd.f32 %v1436_v22, %v1044_v37  ;;  %v1010_v31 = vpop.f32.mrb[2].mxu1 }
 0x291   : > { %1055 = vst [vmem:[%s272_s10] sm:$0xff] %v1047_v24  ;;  %v1437_v32 = vadd.f32 %v1010_v31, %v683_v29  ;;  %v1012_v33 = vpop.f32.mrb[3].mxu1 }
 0x292   : > { %1056 = vst [vmem:[%s272_s10 + $0x8] sm:$0xff] %v1048_v27  ;;  %v1438_v0 = vadd.f32 %v1012_v33, %v685_v18 }
 0x293   : > { %v1049_v35 = vadd.f32 %v1437_v32, %v1040_v38 }
 0x294   : > { %v1050_v26 = vadd.f32 %v1438_v0, %v1044_v37  ;;  %v1016_v36 = vpop.f32.mrb[4].mxu1 }
 0x295   : > { %1057 = vst [vmem:[%s272_s10 + $0x10] sm:$0xff] %v1049_v35  ;;  %v1439_v25 = vadd.f32 %v1016_v36, %v689_v19  ;;  %v1018_v28 = vpop.f32.mrb[5].mxu1 }
 0x296   : > { %1058 = vst [vmem:[%s272_s10 + $0x18] sm:$0xff] %v1050_v26  ;;  %v1440_v39 = vadd.f32 %v1018_v28, %v691_v44 }
 0x297   : > { %v1051_v41 = vadd.f32 %v1439_v25, %v1040_v38 }
 0x298   : > { %v1052_v42 = vadd.f32 %v1440_v39, %v1044_v37  ;;  %v1022_v43 = vpop.f32.mrb[6].mxu1 }
 0x299   : > { %1059 = vst [vmem:[%s272_s10 + $0x20] sm:$0xff] %v1051_v41  ;;  %v1441_v45 = vadd.f32 %v1022_v43, %v695_v52  ;;  %v1024_v46 = vpop.f32.mrb[7].mxu1 }
 0x29a   : > { %1060 = vst [vmem:[%s272_s10 + $0x28] sm:$0xff] %v1052_v42  ;;  %v1442_v47 = vadd.f32 %v1024_v46, %v697_v20 }
 0x29b   : > { %v1053_v48 = vadd.f32 %v1441_v45, %v1040_v38 }
 0x29c   : > { %v1054_v49 = vadd.f32 %v1442_v47, %v1044_v37 }
 0x29d   : > { %1061 = vst [vmem:[%s272_s10 + $0x30] sm:$0xff] %v1053_v48 }
 0x29e   : > { %1062 = vst [vmem:[%s272_s10 + $0x38] sm:$0xff] %v1054_v49 }
 0x29f   : > { %1622 = shalt.err (!%p1619_p1)
}
 0x2a0   : > { %s1623_s12 = scalar_lea.hbm %s2037_s11, 1024  ;;  %s1627_s15 = scalar_lea.hbm %s2086_s5, 2048 }
 0x2a1   : > { %p1624_p13 = scmp.ne.s32.totalorder %s2037_s11, %s1623_s12  ;;  %p1628_p4 = scmp.lt.u32.totalorder %s2037_s11, %s2086_s5 }
 0x2a2   : > { %p1629_p5 = scmp.lt.u32.totalorder %s1627_s15, %s1623_s12  ;;  %p1631_p11 = scmp.lt.u32.totalorder %s1623_s12, %s2037_s11 }
 0x2a3   : > { %p1625_p6 = pnand %p1624_p13, %p2100_p0 }
 0x2a4   : > { %p1630_p8 = por %p1629_p5, %p1628_p4 }
 0x2a5   : > { %p1626_p10 = pneg %p1625_p6 }
 0x2a6   : > { %p1632_p2 = por %p1631_p11, %p1630_p8 }
 0x2a8   : > { %p1633_p3 = pnand %p1632_p2, %p1626_p10 }
 0x2aa   : > { %1636 = shalt.err (!%p1633_p3)
}
 0x2ab   : > { %s1688_s13 = smov 256   ;;  %s1689_s9 = smov 16  }
 0x2ac   : > { %1461 = dma.vmem_to_hbm [thread:$0]  (%p2100_p0), %s2032_s28, 1024, %s2037_s11, %s1064_s22, %s1688_s13, %s1688_s13, %s1689_s9  }
 0x2ad PF: > { %s1092_s30 = sand.u32 1, %s1667_s18   ;;  %p2101_p7 = scmp.ne.s32.totalorder %s2091_s25, 0 }
 0x2ae   : > { %p2102_p9 = scmp.ge.s32.totalorder %s1679_s21, 2  ;;  %s1093_s17 = scalar_lea.sflag [#allocation5], %s1092_s30 }
 0x2b0   : > { %p1475_p12 = pnand %p2102_p9, %p2101_p7 }
 0x2b2   : > { %1662 = dma.done.wait (!%p1475_p12), %s1093_s17, 1024  }
 0x2b3   : > { %1664 = vsyncadd (!%p1475_p12), %s1093_s17, 4294966272  ;;  %p19_p1 = scmp.ge.s32.totalorder %s1836_s29, 4   ;;  %s2103_s18 = smov %s1671_s19 }
 0x2b4   : > { %s2104_s19 = smov %s1675_s20  ;;  %s2105_s20 = smov %s1852_s27 }
 0x2b5   : > { %s2106_s21 = smov %s1836_s29  ;;  %21 = sbr.rel (!%p19_p1) target bundleno = 6 (0x6), region = 97 }
 0x2bc   :  { %1098 = vsyncpa [#allocation4], 1 }
 0x2bd   :  { %1100 = vsyncpa [#allocation4 + $0x1], 1 }
 0x2be   :  { %1101 = vsyncpa [#allocation7], 1 }
 0x2bf   :  { %1102 = vsyncpa [#allocation5], 1 }
 0x2c0   :  { %1104 = vsyncpa [#allocation5 + $0x1], 1 }

</bundles_post_ra>
